<compile_context>
chip_gen: v5e
topology: v5e:2x2
jax: 0.10.0
libtpu: 0.0.40
codegen_flags: <defaults>
</compile_context>

<pallas_src>
import functools

import jax
import jax.numpy as jnp
from jax.experimental import pallas as pl
from jax.experimental.pallas import tpu as pltpu

_LANE = 128   # vreg lane width
_SUB = 8      # vreg sublane count


def polarnet_kernel(params_ref, x_ref, o_ref, *, num_hid):
    """One grid step over tile_rows * 128 points.

    params_ref : (4*H + 1,) f32 in SMEM = [w1[:,0] | w1[:,1] | b1 | w2[0,:] | b2]
    x_ref      : (2, tile_rows, 128) f32 in VMEM  (row 0 = cart. x, row 1 = y)
    o_ref      : (tile_rows, 128) f32 in VMEM
    """
    px = x_ref[0]                                    # (tile_rows, 128), dense
    py = x_ref[1]                                    # (tile_rows, 128), dense

    # polar transform: r = sqrt(x^2 + y^2), a = atan2(y, x)   (EUP, dense vregs)
    r = jnp.sqrt(px * px + py * py)
    a = jnp.arctan2(py, px)

    # linear_func_1 + tanh + linear_func_2, as H unrolled vector-scalar FMAs.
    # z directly accumulates the second linear layer (no (H, ...) intermediate,
    # no sublane reduce, no MXU).
    z = jnp.full(r.shape, params_ref[4 * num_hid], dtype=jnp.float32)   # + b2
    for h in range(num_hid):
        w_r = params_ref[h]                          # scalars from SMEM
        w_a = params_ref[num_hid + h]
        b_h = params_ref[2 * num_hid + h]
        w_o = params_ref[3 * num_hid + h]
        hid = jnp.tanh(r * w_r + a * w_a + b_h)      # EUP tanh on dense vregs
        z = z + hid * w_o                            # VALU accumulate

    o_ref[...] = jax.nn.sigmoid(z)                   # dense unmasked store


@functools.partial(jax.jit, static_argnames=("tile_n",))
def polarnet_forward(x, w1, b1, w2, b2, *, tile_n=32768):
    """x: (N, 2) f32; w1: (H, 2); b1: (H,); w2: (1, H); b2: (1,) (PyTorch shapes).

    Returns (N, 1) f32, matching PolarNet.forward.
    """
    N, two = x.shape
    assert two == 2
    H = w1.shape[0]

    # ---- tiling: batch laid out as (rows, 128) with 8-sublane-aligned tiles --
    chunk = _SUB * _LANE                              # 1024 points per 8x128 slab
    slabs_needed = pl.cdiv(N, chunk)
    tile_slabs = max(1, min(tile_n // chunk, slabs_needed))
    # keep >= 2 grid steps when there is enough data (v7x has 2 TensorCores)
    if slabs_needed >= 2 and tile_slabs > pl.cdiv(slabs_needed, 2):
        tile_slabs = pl.cdiv(slabs_needed, 2)
    n_steps = pl.cdiv(slabs_needed, tile_slabs)
    tile_rows = tile_slabs * _SUB                     # multiple of 8
    rows_total = n_steps * tile_rows
    Np = rows_total * _LANE                           # padded point count

    # ---- layout plumbing (fused into this jit: one extra pass over x) --------
    x_pad = jnp.pad(x.astype(jnp.float32), ((0, Np - N), (0, 0)))
    xt = x_pad.T.reshape(2, rows_total, _LANE)        # feature-major, lane-dense

    # pack all parameters into one small SMEM-resident vector
    params = jnp.concatenate(
        [w1[:, 0], w1[:, 1], b1.reshape(H), w2.reshape(H), b2.reshape(1)]
    ).astype(jnp.float32)                             # (4H + 1,)

    # EUP/transcendental-bound workload; ~12 bytes per point of HBM traffic.
    cost = pl.CostEstimate(
        flops=int(Np * (6 * H + 10)),
        transcendentals=int(Np * (H + 3)),
        bytes_accessed=int(12 * Np + 4 * (4 * H + 1)),
    )

    out = pl.pallas_call(
        functools.partial(polarnet_kernel, num_hid=H),
        out_shape=jax.ShapeDtypeStruct((rows_total, _LANE), jnp.float32),
        grid_spec=pltpu.PrefetchScalarGridSpec(
            num_scalar_prefetch=0,
            grid=(n_steps,),
            in_specs=[
                pl.BlockSpec(memory_space=pltpu.MemorySpace.SMEM),         # params
                pl.BlockSpec((2, tile_rows, _LANE), lambda i: (0, i, 0)),  # x tile
            ],
            out_specs=pl.BlockSpec((tile_rows, _LANE), lambda i: (i, 0)),
        ),
        compiler_params=pltpu.CompilerParams(
            dimension_semantics=("parallel",)),
        cost_estimate=cost,
    )(params, xt)

    # un-pad and match the PyTorch (N, 1) output shape
    return out.reshape(-1)[:N].reshape(N, 1)


def polarnet_ref(x, w1, b1, w2, b2):
    px, py = x[:, 0], x[:, 1]
    r = jnp.sqrt(px * px + py * py)
    a = jnp.arctan2(py, px)
    coord = jnp.stack([r, a], axis=1)                 # (N, 2)
    h = jnp.tanh(coord @ w1.T + b1)                   # (N, H)
    return jax.nn.sigmoid(h @ w2.T + b2)              # (N, 1)


if __name__ == "__main__":
    num_hid = 32
    N = 2048          # small batch of 2-D points; tile_n=1024 -> 2 parallel steps

    key = jax.random.PRNGKey(0)
    kx, k1, kb1, k2, kb2 = jax.random.split(key, 5)

    x = jax.random.normal(kx, (N, 2), dtype=jnp.float32) * 2.0

    # PyTorch Linear(2, H) / Linear(H, 1) weight shapes.
    w1 = jax.random.uniform(k1, (num_hid, 2), jnp.float32, -0.7, 0.7)
    b1 = jax.random.uniform(kb1, (num_hid,), jnp.float32, -0.7, 0.7)
    w2 = jax.random.uniform(k2, (1, num_hid), jnp.float32, -0.2, 0.2)
    b2 = jax.random.uniform(kb2, (1,), jnp.float32, -0.2, 0.2)

    out = polarnet_forward(x, w1, b1, w2, b2, tile_n=1024)
    out = jax.block_until_ready(out)

    ref = polarnet_ref(x, w1, b1, w2, b2)
    assert out.shape == (N, 1)
    assert jnp.allclose(out, ref, atol=1e-5, rtol=1e-5)

    print("KERNEL_OK")
</pallas_src>

<mosaic_0001>
module attributes {stable_mosaic.version = 11 : i64} {
  func.func @polarnet_kernel(%arg0: i32, %arg1: memref<129xf32, #tpu.memory_space<smem>>, %arg2: memref<2x8x128xf32, #tpu.memory_space<vmem>>, %arg3: memref<8x128xf32, #tpu.memory_space<vmem>>) attributes {dimension_semantics = [#tpu.dimension_semantics<parallel>], iteration_bounds = array<i64: 2>, scalar_prefetch = 0 : i64, scratch_operands = 0 : i64, tpu.core_type = #tpu.core_type<tc>, window_params = [{transform_indices = @transform_0, window_bounds = array<i64: 129>}, {transform_indices = @transform_1, window_bounds = array<i64: 2, 8, 128>}, {transform_indices = @transform_2, window_bounds = array<i64: 8, 128>}]} {
    %c0 = arith.constant 0 : index
    %c0_0 = arith.constant 0 : index
    %c0_1 = arith.constant 0 : index
    %0 = vector.load %arg2[%c0, %c0_0, %c0_1] : memref<2x8x128xf32, #tpu.memory_space<vmem>>, vector<1x8x128xf32>
    %1 = vector.shape_cast %0 : vector<1x8x128xf32> to vector<8x128xf32>
    %c1 = arith.constant 1 : index
    %c0_2 = arith.constant 0 : index
    %c0_3 = arith.constant 0 : index
    %2 = vector.load %arg2[%c1, %c0_2, %c0_3] : memref<2x8x128xf32, #tpu.memory_space<vmem>>, vector<1x8x128xf32>
    %3 = vector.shape_cast %2 : vector<1x8x128xf32> to vector<8x128xf32>
    %4 = arith.mulf %1, %1 : vector<8x128xf32>
    %5 = arith.mulf %3, %3 : vector<8x128xf32>
    %6 = arith.addf %4, %5 : vector<8x128xf32>
    %7 = math.sqrt %6 : vector<8x128xf32>
    %8 = math.atan2 %3, %1 : vector<8x128xf32>
    %c128 = arith.constant 128 : index
    %9 = memref.load %arg1[%c128] : memref<129xf32, #tpu.memory_space<smem>>
    %10 = vector.broadcast %9 : f32 to vector<8x128xf32>
    %c0_4 = arith.constant 0 : index
    %11 = memref.load %arg1[%c0_4] : memref<129xf32, #tpu.memory_space<smem>>
    %c32 = arith.constant 32 : index
    %12 = memref.load %arg1[%c32] : memref<129xf32, #tpu.memory_space<smem>>
    %c64 = arith.constant 64 : index
    %13 = memref.load %arg1[%c64] : memref<129xf32, #tpu.memory_space<smem>>
    %c96 = arith.constant 96 : index
    %14 = memref.load %arg1[%c96] : memref<129xf32, #tpu.memory_space<smem>>
    %15 = vector.broadcast %11 : f32 to vector<8x128xf32>
    %16 = arith.mulf %7, %15 : vector<8x128xf32>
    %17 = vector.broadcast %12 : f32 to vector<8x128xf32>
    %18 = arith.mulf %8, %17 : vector<8x128xf32>
    %19 = arith.addf %16, %18 : vector<8x128xf32>
    %20 = vector.broadcast %13 : f32 to vector<8x128xf32>
    %21 = arith.addf %19, %20 : vector<8x128xf32>
    %22 = math.tanh %21 : vector<8x128xf32>
    %23 = vector.broadcast %14 : f32 to vector<8x128xf32>
    %24 = arith.mulf %22, %23 : vector<8x128xf32>
    %25 = arith.addf %10, %24 : vector<8x128xf32>
    %c1_5 = arith.constant 1 : index
    %26 = memref.load %arg1[%c1_5] : memref<129xf32, #tpu.memory_space<smem>>
    %c33 = arith.constant 33 : index
    %27 = memref.load %arg1[%c33] : memref<129xf32, #tpu.memory_space<smem>>
    %c65 = arith.constant 65 : index
    %28 = memref.load %arg1[%c65] : memref<129xf32, #tpu.memory_space<smem>>
    %c97 = arith.constant 97 : index
    %29 = memref.load %arg1[%c97] : memref<129xf32, #tpu.memory_space<smem>>
    %30 = vector.broadcast %26 : f32 to vector<8x128xf32>
    %31 = arith.mulf %7, %30 : vector<8x128xf32>
    %32 = vector.broadcast %27 : f32 to vector<8x128xf32>
    %33 = arith.mulf %8, %32 : vector<8x128xf32>
    %34 = arith.addf %31, %33 : vector<8x128xf32>
    %35 = vector.broadcast %28 : f32 to vector<8x128xf32>
    %36 = arith.addf %34, %35 : vector<8x128xf32>
    %37 = math.tanh %36 : vector<8x128xf32>
    %38 = vector.broadcast %29 : f32 to vector<8x128xf32>
    %39 = arith.mulf %37, %38 : vector<8x128xf32>
    %40 = arith.addf %25, %39 : vector<8x128xf32>
    %c2 = arith.constant 2 : index
    %41 = memref.load %arg1[%c2] : memref<129xf32, #tpu.memory_space<smem>>
    %c34 = arith.constant 34 : index
    %42 = memref.load %arg1[%c34] : memref<129xf32, #tpu.memory_space<smem>>
    %c66 = arith.constant 66 : index
    %43 = memref.load %arg1[%c66] : memref<129xf32, #tpu.memory_space<smem>>
    %c98 = arith.constant 98 : index
    %44 = memref.load %arg1[%c98] : memref<129xf32, #tpu.memory_space<smem>>
    %45 = vector.broadcast %41 : f32 to vector<8x128xf32>
    %46 = arith.mulf %7, %45 : vector<8x128xf32>
    %47 = vector.broadcast %42 : f32 to vector<8x128xf32>
    %48 = arith.mulf %8, %47 : vector<8x128xf32>
    %49 = arith.addf %46, %48 : vector<8x128xf32>
    %50 = vector.broadcast %43 : f32 to vector<8x128xf32>
    %51 = arith.addf %49, %50 : vector<8x128xf32>
    %52 = math.tanh %51 : vector<8x128xf32>
    %53 = vector.broadcast %44 : f32 to vector<8x128xf32>
    %54 = arith.mulf %52, %53 : vector<8x128xf32>
    %55 = arith.addf %40, %54 : vector<8x128xf32>
    %c3 = arith.constant 3 : index
    %56 = memref.load %arg1[%c3] : memref<129xf32, #tpu.memory_space<smem>>
    %c35 = arith.constant 35 : index
    %57 = memref.load %arg1[%c35] : memref<129xf32, #tpu.memory_space<smem>>
    %c67 = arith.constant 67 : index
    %58 = memref.load %arg1[%c67] : memref<129xf32, #tpu.memory_space<smem>>
    %c99 = arith.constant 99 : index
    %59 = memref.load %arg1[%c99] : memref<129xf32, #tpu.memory_space<smem>>
    %60 = vector.broadcast %56 : f32 to vector<8x128xf32>
    %61 = arith.mulf %7, %60 : vector<8x128xf32>
    %62 = vector.broadcast %57 : f32 to vector<8x128xf32>
    %63 = arith.mulf %8, %62 : vector<8x128xf32>
    %64 = arith.addf %61, %63 : vector<8x128xf32>
    %65 = vector.broadcast %58 : f32 to vector<8x128xf32>
    %66 = arith.addf %64, %65 : vector<8x128xf32>
    %67 = math.tanh %66 : vector<8x128xf32>
    %68 = vector.broadcast %59 : f32 to vector<8x128xf32>
    %69 = arith.mulf %67, %68 : vector<8x128xf32>
    %70 = arith.addf %55, %69 : vector<8x128xf32>
    %c4 = arith.constant 4 : index
    %71 = memref.load %arg1[%c4] : memref<129xf32, #tpu.memory_space<smem>>
    %c36 = arith.constant 36 : index
    %72 = memref.load %arg1[%c36] : memref<129xf32, #tpu.memory_space<smem>>
    %c68 = arith.constant 68 : index
    %73 = memref.load %arg1[%c68] : memref<129xf32, #tpu.memory_space<smem>>
    %c100 = arith.constant 100 : index
    %74 = memref.load %arg1[%c100] : memref<129xf32, #tpu.memory_space<smem>>
    %75 = vector.broadcast %71 : f32 to vector<8x128xf32>
    %76 = arith.mulf %7, %75 : vector<8x128xf32>
    %77 = vector.broadcast %72 : f32 to vector<8x128xf32>
    %78 = arith.mulf %8, %77 : vector<8x128xf32>
    %79 = arith.addf %76, %78 : vector<8x128xf32>
    %80 = vector.broadcast %73 : f32 to vector<8x128xf32>
    %81 = arith.addf %79, %80 : vector<8x128xf32>
    %82 = math.tanh %81 : vector<8x128xf32>
    %83 = vector.broadcast %74 : f32 to vector<8x128xf32>
    %84 = arith.mulf %82, %83 : vector<8x128xf32>
    %85 = arith.addf %70, %84 : vector<8x128xf32>
    %c5 = arith.constant 5 : index
    %86 = memref.load %arg1[%c5] : memref<129xf32, #tpu.memory_space<smem>>
    %c37 = arith.constant 37 : index
    %87 = memref.load %arg1[%c37] : memref<129xf32, #tpu.memory_space<smem>>
    %c69 = arith.constant 69 : index
    %88 = memref.load %arg1[%c69] : memref<129xf32, #tpu.memory_space<smem>>
    %c101 = arith.constant 101 : index
    %89 = memref.load %arg1[%c101] : memref<129xf32, #tpu.memory_space<smem>>
    %90 = vector.broadcast %86 : f32 to vector<8x128xf32>
    %91 = arith.mulf %7, %90 : vector<8x128xf32>
    %92 = vector.broadcast %87 : f32 to vector<8x128xf32>
    %93 = arith.mulf %8, %92 : vector<8x128xf32>
    %94 = arith.addf %91, %93 : vector<8x128xf32>
    %95 = vector.broadcast %88 : f32 to vector<8x128xf32>
    %96 = arith.addf %94, %95 : vector<8x128xf32>
    %97 = math.tanh %96 : vector<8x128xf32>
    %98 = vector.broadcast %89 : f32 to vector<8x128xf32>
    %99 = arith.mulf %97, %98 : vector<8x128xf32>
    %100 = arith.addf %85, %99 : vector<8x128xf32>
    %c6 = arith.constant 6 : index
    %101 = memref.load %arg1[%c6] : memref<129xf32, #tpu.memory_space<smem>>
    %c38 = arith.constant 38 : index
    %102 = memref.load %arg1[%c38] : memref<129xf32, #tpu.memory_space<smem>>
    %c70 = arith.constant 70 : index
    %103 = memref.load %arg1[%c70] : memref<129xf32, #tpu.memory_space<smem>>
    %c102 = arith.constant 102 : index
    %104 = memref.load %arg1[%c102] : memref<129xf32, #tpu.memory_space<smem>>
    %105 = vector.broadcast %101 : f32 to vector<8x128xf32>
    %106 = arith.mulf %7, %105 : vector<8x128xf32>
    %107 = vector.broadcast %102 : f32 to vector<8x128xf32>
    %108 = arith.mulf %8, %107 : vector<8x128xf32>
    %109 = arith.addf %106, %108 : vector<8x128xf32>
    %110 = vector.broadcast %103 : f32 to vector<8x128xf32>
    %111 = arith.addf %109, %110 : vector<8x128xf32>
    %112 = math.tanh %111 : vector<8x128xf32>
    %113 = vector.broadcast %104 : f32 to vector<8x128xf32>
    %114 = arith.mulf %112, %113 : vector<8x128xf32>
    %115 = arith.addf %100, %114 : vector<8x128xf32>
    %c7 = arith.constant 7 : index
    %116 = memref.load %arg1[%c7] : memref<129xf32, #tpu.memory_space<smem>>
    %c39 = arith.constant 39 : index
    %117 = memref.load %arg1[%c39] : memref<129xf32, #tpu.memory_space<smem>>
    %c71 = arith.constant 71 : index
    %118 = memref.load %arg1[%c71] : memref<129xf32, #tpu.memory_space<smem>>
    %c103 = arith.constant 103 : index
    %119 = memref.load %arg1[%c103] : memref<129xf32, #tpu.memory_space<smem>>
    %120 = vector.broadcast %116 : f32 to vector<8x128xf32>
    %121 = arith.mulf %7, %120 : vector<8x128xf32>
    %122 = vector.broadcast %117 : f32 to vector<8x128xf32>
    %123 = arith.mulf %8, %122 : vector<8x128xf32>
    %124 = arith.addf %121, %123 : vector<8x128xf32>
    %125 = vector.broadcast %118 : f32 to vector<8x128xf32>
    %126 = arith.addf %124, %125 : vector<8x128xf32>
    %127 = math.tanh %126 : vector<8x128xf32>
    %128 = vector.broadcast %119 : f32 to vector<8x128xf32>
    %129 = arith.mulf %127, %128 : vector<8x128xf32>
    %130 = arith.addf %115, %129 : vector<8x128xf32>
    %c8 = arith.constant 8 : index
    %131 = memref.load %arg1[%c8] : memref<129xf32, #tpu.memory_space<smem>>
    %c40 = arith.constant 40 : index
    %132 = memref.load %arg1[%c40] : memref<129xf32, #tpu.memory_space<smem>>
    %c72 = arith.constant 72 : index
    %133 = memref.load %arg1[%c72] : memref<129xf32, #tpu.memory_space<smem>>
    %c104 = arith.constant 104 : index
    %134 = memref.load %arg1[%c104] : memref<129xf32, #tpu.memory_space<smem>>
    %135 = vector.broadcast %131 : f32 to vector<8x128xf32>
    %136 = arith.mulf %7, %135 : vector<8x128xf32>
    %137 = vector.broadcast %132 : f32 to vector<8x128xf32>
    %138 = arith.mulf %8, %137 : vector<8x128xf32>
    %139 = arith.addf %136, %138 : vector<8x128xf32>
    %140 = vector.broadcast %133 : f32 to vector<8x128xf32>
    %141 = arith.addf %139, %140 : vector<8x128xf32>
    %142 = math.tanh %141 : vector<8x128xf32>
    %143 = vector.broadcast %134 : f32 to vector<8x128xf32>
    %144 = arith.mulf %142, %143 : vector<8x128xf32>
    %145 = arith.addf %130, %144 : vector<8x128xf32>
    %c9 = arith.constant 9 : index
    %146 = memref.load %arg1[%c9] : memref<129xf32, #tpu.memory_space<smem>>
    %c41 = arith.constant 41 : index
    %147 = memref.load %arg1[%c41] : memref<129xf32, #tpu.memory_space<smem>>
    %c73 = arith.constant 73 : index
    %148 = memref.load %arg1[%c73] : memref<129xf32, #tpu.memory_space<smem>>
    %c105 = arith.constant 105 : index
    %149 = memref.load %arg1[%c105] : memref<129xf32, #tpu.memory_space<smem>>
    %150 = vector.broadcast %146 : f32 to vector<8x128xf32>
    %151 = arith.mulf %7, %150 : vector<8x128xf32>
    %152 = vector.broadcast %147 : f32 to vector<8x128xf32>
    %153 = arith.mulf %8, %152 : vector<8x128xf32>
    %154 = arith.addf %151, %153 : vector<8x128xf32>
    %155 = vector.broadcast %148 : f32 to vector<8x128xf32>
    %156 = arith.addf %154, %155 : vector<8x128xf32>
    %157 = math.tanh %156 : vector<8x128xf32>
    %158 = vector.broadcast %149 : f32 to vector<8x128xf32>
    %159 = arith.mulf %157, %158 : vector<8x128xf32>
    %160 = arith.addf %145, %159 : vector<8x128xf32>
    %c10 = arith.constant 10 : index
    %161 = memref.load %arg1[%c10] : memref<129xf32, #tpu.memory_space<smem>>
    %c42 = arith.constant 42 : index
    %162 = memref.load %arg1[%c42] : memref<129xf32, #tpu.memory_space<smem>>
    %c74 = arith.constant 74 : index
    %163 = memref.load %arg1[%c74] : memref<129xf32, #tpu.memory_space<smem>>
    %c106 = arith.constant 106 : index
    %164 = memref.load %arg1[%c106] : memref<129xf32, #tpu.memory_space<smem>>
    %165 = vector.broadcast %161 : f32 to vector<8x128xf32>
    %166 = arith.mulf %7, %165 : vector<8x128xf32>
    %167 = vector.broadcast %162 : f32 to vector<8x128xf32>
    %168 = arith.mulf %8, %167 : vector<8x128xf32>
    %169 = arith.addf %166, %168 : vector<8x128xf32>
    %170 = vector.broadcast %163 : f32 to vector<8x128xf32>
    %171 = arith.addf %169, %170 : vector<8x128xf32>
    %172 = math.tanh %171 : vector<8x128xf32>
    %173 = vector.broadcast %164 : f32 to vector<8x128xf32>
    %174 = arith.mulf %172, %173 : vector<8x128xf32>
    %175 = arith.addf %160, %174 : vector<8x128xf32>
    %c11 = arith.constant 11 : index
    %176 = memref.load %arg1[%c11] : memref<129xf32, #tpu.memory_space<smem>>
    %c43 = arith.constant 43 : index
    %177 = memref.load %arg1[%c43] : memref<129xf32, #tpu.memory_space<smem>>
    %c75 = arith.constant 75 : index
    %178 = memref.load %arg1[%c75] : memref<129xf32, #tpu.memory_space<smem>>
    %c107 = arith.constant 107 : index
    %179 = memref.load %arg1[%c107] : memref<129xf32, #tpu.memory_space<smem>>
    %180 = vector.broadcast %176 : f32 to vector<8x128xf32>
    %181 = arith.mulf %7, %180 : vector<8x128xf32>
    %182 = vector.broadcast %177 : f32 to vector<8x128xf32>
    %183 = arith.mulf %8, %182 : vector<8x128xf32>
    %184 = arith.addf %181, %183 : vector<8x128xf32>
    %185 = vector.broadcast %178 : f32 to vector<8x128xf32>
    %186 = arith.addf %184, %185 : vector<8x128xf32>
    %187 = math.tanh %186 : vector<8x128xf32>
    %188 = vector.broadcast %179 : f32 to vector<8x128xf32>
    %189 = arith.mulf %187, %188 : vector<8x128xf32>
    %190 = arith.addf %175, %189 : vector<8x128xf32>
    %c12 = arith.constant 12 : index
    %191 = memref.load %arg1[%c12] : memref<129xf32, #tpu.memory_space<smem>>
    %c44 = arith.constant 44 : index
    %192 = memref.load %arg1[%c44] : memref<129xf32, #tpu.memory_space<smem>>
    %c76 = arith.constant 76 : index
    %193 = memref.load %arg1[%c76] : memref<129xf32, #tpu.memory_space<smem>>
    %c108 = arith.constant 108 : index
    %194 = memref.load %arg1[%c108] : memref<129xf32, #tpu.memory_space<smem>>
    %195 = vector.broadcast %191 : f32 to vector<8x128xf32>
    %196 = arith.mulf %7, %195 : vector<8x128xf32>
    %197 = vector.broadcast %192 : f32 to vector<8x128xf32>
    %198 = arith.mulf %8, %197 : vector<8x128xf32>
    %199 = arith.addf %196, %198 : vector<8x128xf32>
    %200 = vector.broadcast %193 : f32 to vector<8x128xf32>
    %201 = arith.addf %199, %200 : vector<8x128xf32>
    %202 = math.tanh %201 : vector<8x128xf32>
    %203 = vector.broadcast %194 : f32 to vector<8x128xf32>
    %204 = arith.mulf %202, %203 : vector<8x128xf32>
    %205 = arith.addf %190, %204 : vector<8x128xf32>
    %c13 = arith.constant 13 : index
    %206 = memref.load %arg1[%c13] : memref<129xf32, #tpu.memory_space<smem>>
    %c45 = arith.constant 45 : index
    %207 = memref.load %arg1[%c45] : memref<129xf32, #tpu.memory_space<smem>>
    %c77 = arith.constant 77 : index
    %208 = memref.load %arg1[%c77] : memref<129xf32, #tpu.memory_space<smem>>
    %c109 = arith.constant 109 : index
    %209 = memref.load %arg1[%c109] : memref<129xf32, #tpu.memory_space<smem>>
    %210 = vector.broadcast %206 : f32 to vector<8x128xf32>
    %211 = arith.mulf %7, %210 : vector<8x128xf32>
    %212 = vector.broadcast %207 : f32 to vector<8x128xf32>
    %213 = arith.mulf %8, %212 : vector<8x128xf32>
    %214 = arith.addf %211, %213 : vector<8x128xf32>
    %215 = vector.broadcast %208 : f32 to vector<8x128xf32>
    %216 = arith.addf %214, %215 : vector<8x128xf32>
    %217 = math.tanh %216 : vector<8x128xf32>
    %218 = vector.broadcast %209 : f32 to vector<8x128xf32>
    %219 = arith.mulf %217, %218 : vector<8x128xf32>
    %220 = arith.addf %205, %219 : vector<8x128xf32>
    %c14 = arith.constant 14 : index
    %221 = memref.load %arg1[%c14] : memref<129xf32, #tpu.memory_space<smem>>
    %c46 = arith.constant 46 : index
    %222 = memref.load %arg1[%c46] : memref<129xf32, #tpu.memory_space<smem>>
    %c78 = arith.constant 78 : index
    %223 = memref.load %arg1[%c78] : memref<129xf32, #tpu.memory_space<smem>>
    %c110 = arith.constant 110 : index
    %224 = memref.load %arg1[%c110] : memref<129xf32, #tpu.memory_space<smem>>
    %225 = vector.broadcast %221 : f32 to vector<8x128xf32>
    %226 = arith.mulf %7, %225 : vector<8x128xf32>
    %227 = vector.broadcast %222 : f32 to vector<8x128xf32>
    %228 = arith.mulf %8, %227 : vector<8x128xf32>
    %229 = arith.addf %226, %228 : vector<8x128xf32>
    %230 = vector.broadcast %223 : f32 to vector<8x128xf32>
    %231 = arith.addf %229, %230 : vector<8x128xf32>
    %232 = math.tanh %231 : vector<8x128xf32>
    %233 = vector.broadcast %224 : f32 to vector<8x128xf32>
    %234 = arith.mulf %232, %233 : vector<8x128xf32>
    %235 = arith.addf %220, %234 : vector<8x128xf32>
    %c15 = arith.constant 15 : index
    %236 = memref.load %arg1[%c15] : memref<129xf32, #tpu.memory_space<smem>>
    %c47 = arith.constant 47 : index
    %237 = memref.load %arg1[%c47] : memref<129xf32, #tpu.memory_space<smem>>
    %c79 = arith.constant 79 : index
    %238 = memref.load %arg1[%c79] : memref<129xf32, #tpu.memory_space<smem>>
    %c111 = arith.constant 111 : index
    %239 = memref.load %arg1[%c111] : memref<129xf32, #tpu.memory_space<smem>>
    %240 = vector.broadcast %236 : f32 to vector<8x128xf32>
    %241 = arith.mulf %7, %240 : vector<8x128xf32>
    %242 = vector.broadcast %237 : f32 to vector<8x128xf32>
    %243 = arith.mulf %8, %242 : vector<8x128xf32>
    %244 = arith.addf %241, %243 : vector<8x128xf32>
    %245 = vector.broadcast %238 : f32 to vector<8x128xf32>
    %246 = arith.addf %244, %245 : vector<8x128xf32>
    %247 = math.tanh %246 : vector<8x128xf32>
    %248 = vector.broadcast %239 : f32 to vector<8x128xf32>
    %249 = arith.mulf %247, %248 : vector<8x128xf32>
    %250 = arith.addf %235, %249 : vector<8x128xf32>
    %c16 = arith.constant 16 : index
    %251 = memref.load %arg1[%c16] : memref<129xf32, #tpu.memory_space<smem>>
    %c48 = arith.constant 48 : index
    %252 = memref.load %arg1[%c48] : memref<129xf32, #tpu.memory_space<smem>>
    %c80 = arith.constant 80 : index
    %253 = memref.load %arg1[%c80] : memref<129xf32, #tpu.memory_space<smem>>
    %c112 = arith.constant 112 : index
    %254 = memref.load %arg1[%c112] : memref<129xf32, #tpu.memory_space<smem>>
    %255 = vector.broadcast %251 : f32 to vector<8x128xf32>
    %256 = arith.mulf %7, %255 : vector<8x128xf32>
    %257 = vector.broadcast %252 : f32 to vector<8x128xf32>
    %258 = arith.mulf %8, %257 : vector<8x128xf32>
    %259 = arith.addf %256, %258 : vector<8x128xf32>
    %260 = vector.broadcast %253 : f32 to vector<8x128xf32>
    %261 = arith.addf %259, %260 : vector<8x128xf32>
    %262 = math.tanh %261 : vector<8x128xf32>
    %263 = vector.broadcast %254 : f32 to vector<8x128xf32>
    %264 = arith.mulf %262, %263 : vector<8x128xf32>
    %265 = arith.addf %250, %264 : vector<8x128xf32>
    %c17 = arith.constant 17 : index
    %266 = memref.load %arg1[%c17] : memref<129xf32, #tpu.memory_space<smem>>
    %c49 = arith.constant 49 : index
    %267 = memref.load %arg1[%c49] : memref<129xf32, #tpu.memory_space<smem>>
    %c81 = arith.constant 81 : index
    %268 = memref.load %arg1[%c81] : memref<129xf32, #tpu.memory_space<smem>>
    %c113 = arith.constant 113 : index
    %269 = memref.load %arg1[%c113] : memref<129xf32, #tpu.memory_space<smem>>
    %270 = vector.broadcast %266 : f32 to vector<8x128xf32>
    %271 = arith.mulf %7, %270 : vector<8x128xf32>
    %272 = vector.broadcast %267 : f32 to vector<8x128xf32>
    %273 = arith.mulf %8, %272 : vector<8x128xf32>
    %274 = arith.addf %271, %273 : vector<8x128xf32>
    %275 = vector.broadcast %268 : f32 to vector<8x128xf32>
    %276 = arith.addf %274, %275 : vector<8x128xf32>
    %277 = math.tanh %276 : vector<8x128xf32>
    %278 = vector.broadcast %269 : f32 to vector<8x128xf32>
    %279 = arith.mulf %277, %278 : vector<8x128xf32>
    %280 = arith.addf %265, %279 : vector<8x128xf32>
    %c18 = arith.constant 18 : index
    %281 = memref.load %arg1[%c18] : memref<129xf32, #tpu.memory_space<smem>>
    %c50 = arith.constant 50 : index
    %282 = memref.load %arg1[%c50] : memref<129xf32, #tpu.memory_space<smem>>
    %c82 = arith.constant 82 : index
    %283 = memref.load %arg1[%c82] : memref<129xf32, #tpu.memory_space<smem>>
    %c114 = arith.constant 114 : index
    %284 = memref.load %arg1[%c114] : memref<129xf32, #tpu.memory_space<smem>>
    %285 = vector.broadcast %281 : f32 to vector<8x128xf32>
    %286 = arith.mulf %7, %285 : vector<8x128xf32>
    %287 = vector.broadcast %282 : f32 to vector<8x128xf32>
    %288 = arith.mulf %8, %287 : vector<8x128xf32>
    %289 = arith.addf %286, %288 : vector<8x128xf32>
    %290 = vector.broadcast %283 : f32 to vector<8x128xf32>
    %291 = arith.addf %289, %290 : vector<8x128xf32>
    %292 = math.tanh %291 : vector<8x128xf32>
    %293 = vector.broadcast %284 : f32 to vector<8x128xf32>
    %294 = arith.mulf %292, %293 : vector<8x128xf32>
    %295 = arith.addf %280, %294 : vector<8x128xf32>
    %c19 = arith.constant 19 : index
    %296 = memref.load %arg1[%c19] : memref<129xf32, #tpu.memory_space<smem>>
    %c51 = arith.constant 51 : index
    %297 = memref.load %arg1[%c51] : memref<129xf32, #tpu.memory_space<smem>>
    %c83 = arith.constant 83 : index
    %298 = memref.load %arg1[%c83] : memref<129xf32, #tpu.memory_space<smem>>
    %c115 = arith.constant 115 : index
    %299 = memref.load %arg1[%c115] : memref<129xf32, #tpu.memory_space<smem>>
    %300 = vector.broadcast %296 : f32 to vector<8x128xf32>
    %301 = arith.mulf %7, %300 : vector<8x128xf32>
    %302 = vector.broadcast %297 : f32 to vector<8x128xf32>
    %303 = arith.mulf %8, %302 : vector<8x128xf32>
    %304 = arith.addf %301, %303 : vector<8x128xf32>
    %305 = vector.broadcast %298 : f32 to vector<8x128xf32>
    %306 = arith.addf %304, %305 : vector<8x128xf32>
    %307 = math.tanh %306 : vector<8x128xf32>
    %308 = vector.broadcast %299 : f32 to vector<8x128xf32>
    %309 = arith.mulf %307, %308 : vector<8x128xf32>
    %310 = arith.addf %295, %309 : vector<8x128xf32>
    %c20 = arith.constant 20 : index
    %311 = memref.load %arg1[%c20] : memref<129xf32, #tpu.memory_space<smem>>
    %c52 = arith.constant 52 : index
    %312 = memref.load %arg1[%c52] : memref<129xf32, #tpu.memory_space<smem>>
    %c84 = arith.constant 84 : index
    %313 = memref.load %arg1[%c84] : memref<129xf32, #tpu.memory_space<smem>>
    %c116 = arith.constant 116 : index
    %314 = memref.load %arg1[%c116] : memref<129xf32, #tpu.memory_space<smem>>
    %315 = vector.broadcast %311 : f32 to vector<8x128xf32>
    %316 = arith.mulf %7, %315 : vector<8x128xf32>
    %317 = vector.broadcast %312 : f32 to vector<8x128xf32>
    %318 = arith.mulf %8, %317 : vector<8x128xf32>
    %319 = arith.addf %316, %318 : vector<8x128xf32>
    %320 = vector.broadcast %313 : f32 to vector<8x128xf32>
    %321 = arith.addf %319, %320 : vector<8x128xf32>
    %322 = math.tanh %321 : vector<8x128xf32>
    %323 = vector.broadcast %314 : f32 to vector<8x128xf32>
    %324 = arith.mulf %322, %323 : vector<8x128xf32>
    %325 = arith.addf %310, %324 : vector<8x128xf32>
    %c21 = arith.constant 21 : index
    %326 = memref.load %arg1[%c21] : memref<129xf32, #tpu.memory_space<smem>>
    %c53 = arith.constant 53 : index
    %327 = memref.load %arg1[%c53] : memref<129xf32, #tpu.memory_space<smem>>
    %c85 = arith.constant 85 : index
    %328 = memref.load %arg1[%c85] : memref<129xf32, #tpu.memory_space<smem>>
    %c117 = arith.constant 117 : index
    %329 = memref.load %arg1[%c117] : memref<129xf32, #tpu.memory_space<smem>>
    %330 = vector.broadcast %326 : f32 to vector<8x128xf32>
    %331 = arith.mulf %7, %330 : vector<8x128xf32>
    %332 = vector.broadcast %327 : f32 to vector<8x128xf32>
    %333 = arith.mulf %8, %332 : vector<8x128xf32>
    %334 = arith.addf %331, %333 : vector<8x128xf32>
    %335 = vector.broadcast %328 : f32 to vector<8x128xf32>
    %336 = arith.addf %334, %335 : vector<8x128xf32>
    %337 = math.tanh %336 : vector<8x128xf32>
    %338 = vector.broadcast %329 : f32 to vector<8x128xf32>
    %339 = arith.mulf %337, %338 : vector<8x128xf32>
    %340 = arith.addf %325, %339 : vector<8x128xf32>
    %c22 = arith.constant 22 : index
    %341 = memref.load %arg1[%c22] : memref<129xf32, #tpu.memory_space<smem>>
    %c54 = arith.constant 54 : index
    %342 = memref.load %arg1[%c54] : memref<129xf32, #tpu.memory_space<smem>>
    %c86 = arith.constant 86 : index
    %343 = memref.load %arg1[%c86] : memref<129xf32, #tpu.memory_space<smem>>
    %c118 = arith.constant 118 : index
    %344 = memref.load %arg1[%c118] : memref<129xf32, #tpu.memory_space<smem>>
    %345 = vector.broadcast %341 : f32 to vector<8x128xf32>
    %346 = arith.mulf %7, %345 : vector<8x128xf32>
    %347 = vector.broadcast %342 : f32 to vector<8x128xf32>
    %348 = arith.mulf %8, %347 : vector<8x128xf32>
    %349 = arith.addf %346, %348 : vector<8x128xf32>
    %350 = vector.broadcast %343 : f32 to vector<8x128xf32>
    %351 = arith.addf %349, %350 : vector<8x128xf32>
    %352 = math.tanh %351 : vector<8x128xf32>
    %353 = vector.broadcast %344 : f32 to vector<8x128xf32>
    %354 = arith.mulf %352, %353 : vector<8x128xf32>
    %355 = arith.addf %340, %354 : vector<8x128xf32>
    %c23 = arith.constant 23 : index
    %356 = memref.load %arg1[%c23] : memref<129xf32, #tpu.memory_space<smem>>
    %c55 = arith.constant 55 : index
    %357 = memref.load %arg1[%c55] : memref<129xf32, #tpu.memory_space<smem>>
    %c87 = arith.constant 87 : index
    %358 = memref.load %arg1[%c87] : memref<129xf32, #tpu.memory_space<smem>>
    %c119 = arith.constant 119 : index
    %359 = memref.load %arg1[%c119] : memref<129xf32, #tpu.memory_space<smem>>
    %360 = vector.broadcast %356 : f32 to vector<8x128xf32>
    %361 = arith.mulf %7, %360 : vector<8x128xf32>
    %362 = vector.broadcast %357 : f32 to vector<8x128xf32>
    %363 = arith.mulf %8, %362 : vector<8x128xf32>
    %364 = arith.addf %361, %363 : vector<8x128xf32>
    %365 = vector.broadcast %358 : f32 to vector<8x128xf32>
    %366 = arith.addf %364, %365 : vector<8x128xf32>
    %367 = math.tanh %366 : vector<8x128xf32>
    %368 = vector.broadcast %359 : f32 to vector<8x128xf32>
    %369 = arith.mulf %367, %368 : vector<8x128xf32>
    %370 = arith.addf %355, %369 : vector<8x128xf32>
    %c24 = arith.constant 24 : index
    %371 = memref.load %arg1[%c24] : memref<129xf32, #tpu.memory_space<smem>>
    %c56 = arith.constant 56 : index
    %372 = memref.load %arg1[%c56] : memref<129xf32, #tpu.memory_space<smem>>
    %c88 = arith.constant 88 : index
    %373 = memref.load %arg1[%c88] : memref<129xf32, #tpu.memory_space<smem>>
    %c120 = arith.constant 120 : index
    %374 = memref.load %arg1[%c120] : memref<129xf32, #tpu.memory_space<smem>>
    %375 = vector.broadcast %371 : f32 to vector<8x128xf32>
    %376 = arith.mulf %7, %375 : vector<8x128xf32>
    %377 = vector.broadcast %372 : f32 to vector<8x128xf32>
    %378 = arith.mulf %8, %377 : vector<8x128xf32>
    %379 = arith.addf %376, %378 : vector<8x128xf32>
    %380 = vector.broadcast %373 : f32 to vector<8x128xf32>
    %381 = arith.addf %379, %380 : vector<8x128xf32>
    %382 = math.tanh %381 : vector<8x128xf32>
    %383 = vector.broadcast %374 : f32 to vector<8x128xf32>
    %384 = arith.mulf %382, %383 : vector<8x128xf32>
    %385 = arith.addf %370, %384 : vector<8x128xf32>
    %c25 = arith.constant 25 : index
    %386 = memref.load %arg1[%c25] : memref<129xf32, #tpu.memory_space<smem>>
    %c57 = arith.constant 57 : index
    %387 = memref.load %arg1[%c57] : memref<129xf32, #tpu.memory_space<smem>>
    %c89 = arith.constant 89 : index
    %388 = memref.load %arg1[%c89] : memref<129xf32, #tpu.memory_space<smem>>
    %c121 = arith.constant 121 : index
    %389 = memref.load %arg1[%c121] : memref<129xf32, #tpu.memory_space<smem>>
    %390 = vector.broadcast %386 : f32 to vector<8x128xf32>
    %391 = arith.mulf %7, %390 : vector<8x128xf32>
    %392 = vector.broadcast %387 : f32 to vector<8x128xf32>
    %393 = arith.mulf %8, %392 : vector<8x128xf32>
    %394 = arith.addf %391, %393 : vector<8x128xf32>
    %395 = vector.broadcast %388 : f32 to vector<8x128xf32>
    %396 = arith.addf %394, %395 : vector<8x128xf32>
    %397 = math.tanh %396 : vector<8x128xf32>
    %398 = vector.broadcast %389 : f32 to vector<8x128xf32>
    %399 = arith.mulf %397, %398 : vector<8x128xf32>
    %400 = arith.addf %385, %399 : vector<8x128xf32>
    %c26 = arith.constant 26 : index
    %401 = memref.load %arg1[%c26] : memref<129xf32, #tpu.memory_space<smem>>
    %c58 = arith.constant 58 : index
    %402 = memref.load %arg1[%c58] : memref<129xf32, #tpu.memory_space<smem>>
    %c90 = arith.constant 90 : index
    %403 = memref.load %arg1[%c90] : memref<129xf32, #tpu.memory_space<smem>>
    %c122 = arith.constant 122 : index
    %404 = memref.load %arg1[%c122] : memref<129xf32, #tpu.memory_space<smem>>
    %405 = vector.broadcast %401 : f32 to vector<8x128xf32>
    %406 = arith.mulf %7, %405 : vector<8x128xf32>
    %407 = vector.broadcast %402 : f32 to vector<8x128xf32>
    %408 = arith.mulf %8, %407 : vector<8x128xf32>
    %409 = arith.addf %406, %408 : vector<8x128xf32>
    %410 = vector.broadcast %403 : f32 to vector<8x128xf32>
    %411 = arith.addf %409, %410 : vector<8x128xf32>
    %412 = math.tanh %411 : vector<8x128xf32>
    %413 = vector.broadcast %404 : f32 to vector<8x128xf32>
    %414 = arith.mulf %412, %413 : vector<8x128xf32>
    %415 = arith.addf %400, %414 : vector<8x128xf32>
    %c27 = arith.constant 27 : index
    %416 = memref.load %arg1[%c27] : memref<129xf32, #tpu.memory_space<smem>>
    %c59 = arith.constant 59 : index
    %417 = memref.load %arg1[%c59] : memref<129xf32, #tpu.memory_space<smem>>
    %c91 = arith.constant 91 : index
    %418 = memref.load %arg1[%c91] : memref<129xf32, #tpu.memory_space<smem>>
    %c123 = arith.constant 123 : index
    %419 = memref.load %arg1[%c123] : memref<129xf32, #tpu.memory_space<smem>>
    %420 = vector.broadcast %416 : f32 to vector<8x128xf32>
    %421 = arith.mulf %7, %420 : vector<8x128xf32>
    %422 = vector.broadcast %417 : f32 to vector<8x128xf32>
    %423 = arith.mulf %8, %422 : vector<8x128xf32>
    %424 = arith.addf %421, %423 : vector<8x128xf32>
    %425 = vector.broadcast %418 : f32 to vector<8x128xf32>
    %426 = arith.addf %424, %425 : vector<8x128xf32>
    %427 = math.tanh %426 : vector<8x128xf32>
    %428 = vector.broadcast %419 : f32 to vector<8x128xf32>
    %429 = arith.mulf %427, %428 : vector<8x128xf32>
    %430 = arith.addf %415, %429 : vector<8x128xf32>
    %c28 = arith.constant 28 : index
    %431 = memref.load %arg1[%c28] : memref<129xf32, #tpu.memory_space<smem>>
    %c60 = arith.constant 60 : index
    %432 = memref.load %arg1[%c60] : memref<129xf32, #tpu.memory_space<smem>>
    %c92 = arith.constant 92 : index
    %433 = memref.load %arg1[%c92] : memref<129xf32, #tpu.memory_space<smem>>
    %c124 = arith.constant 124 : index
    %434 = memref.load %arg1[%c124] : memref<129xf32, #tpu.memory_space<smem>>
    %435 = vector.broadcast %431 : f32 to vector<8x128xf32>
    %436 = arith.mulf %7, %435 : vector<8x128xf32>
    %437 = vector.broadcast %432 : f32 to vector<8x128xf32>
    %438 = arith.mulf %8, %437 : vector<8x128xf32>
    %439 = arith.addf %436, %438 : vector<8x128xf32>
    %440 = vector.broadcast %433 : f32 to vector<8x128xf32>
    %441 = arith.addf %439, %440 : vector<8x128xf32>
    %442 = math.tanh %441 : vector<8x128xf32>
    %443 = vector.broadcast %434 : f32 to vector<8x128xf32>
    %444 = arith.mulf %442, %443 : vector<8x128xf32>
    %445 = arith.addf %430, %444 : vector<8x128xf32>
    %c29 = arith.constant 29 : index
    %446 = memref.load %arg1[%c29] : memref<129xf32, #tpu.memory_space<smem>>
    %c61 = arith.constant 61 : index
    %447 = memref.load %arg1[%c61] : memref<129xf32, #tpu.memory_space<smem>>
    %c93 = arith.constant 93 : index
    %448 = memref.load %arg1[%c93] : memref<129xf32, #tpu.memory_space<smem>>
    %c125 = arith.constant 125 : index
    %449 = memref.load %arg1[%c125] : memref<129xf32, #tpu.memory_space<smem>>
    %450 = vector.broadcast %446 : f32 to vector<8x128xf32>
    %451 = arith.mulf %7, %450 : vector<8x128xf32>
    %452 = vector.broadcast %447 : f32 to vector<8x128xf32>
    %453 = arith.mulf %8, %452 : vector<8x128xf32>
    %454 = arith.addf %451, %453 : vector<8x128xf32>
    %455 = vector.broadcast %448 : f32 to vector<8x128xf32>
    %456 = arith.addf %454, %455 : vector<8x128xf32>
    %457 = math.tanh %456 : vector<8x128xf32>
    %458 = vector.broadcast %449 : f32 to vector<8x128xf32>
    %459 = arith.mulf %457, %458 : vector<8x128xf32>
    %460 = arith.addf %445, %459 : vector<8x128xf32>
    %c30 = arith.constant 30 : index
    %461 = memref.load %arg1[%c30] : memref<129xf32, #tpu.memory_space<smem>>
    %c62 = arith.constant 62 : index
    %462 = memref.load %arg1[%c62] : memref<129xf32, #tpu.memory_space<smem>>
    %c94 = arith.constant 94 : index
    %463 = memref.load %arg1[%c94] : memref<129xf32, #tpu.memory_space<smem>>
    %c126 = arith.constant 126 : index
    %464 = memref.load %arg1[%c126] : memref<129xf32, #tpu.memory_space<smem>>
    %465 = vector.broadcast %461 : f32 to vector<8x128xf32>
    %466 = arith.mulf %7, %465 : vector<8x128xf32>
    %467 = vector.broadcast %462 : f32 to vector<8x128xf32>
    %468 = arith.mulf %8, %467 : vector<8x128xf32>
    %469 = arith.addf %466, %468 : vector<8x128xf32>
    %470 = vector.broadcast %463 : f32 to vector<8x128xf32>
    %471 = arith.addf %469, %470 : vector<8x128xf32>
    %472 = math.tanh %471 : vector<8x128xf32>
    %473 = vector.broadcast %464 : f32 to vector<8x128xf32>
    %474 = arith.mulf %472, %473 : vector<8x128xf32>
    %475 = arith.addf %460, %474 : vector<8x128xf32>
    %c31 = arith.constant 31 : index
    %476 = memref.load %arg1[%c31] : memref<129xf32, #tpu.memory_space<smem>>
    %c63 = arith.constant 63 : index
    %477 = memref.load %arg1[%c63] : memref<129xf32, #tpu.memory_space<smem>>
    %c95 = arith.constant 95 : index
    %478 = memref.load %arg1[%c95] : memref<129xf32, #tpu.memory_space<smem>>
    %c127 = arith.constant 127 : index
    %479 = memref.load %arg1[%c127] : memref<129xf32, #tpu.memory_space<smem>>
    %480 = vector.broadcast %476 : f32 to vector<8x128xf32>
    %481 = arith.mulf %7, %480 : vector<8x128xf32>
    %482 = vector.broadcast %477 : f32 to vector<8x128xf32>
    %483 = arith.mulf %8, %482 : vector<8x128xf32>
    %484 = arith.addf %481, %483 : vector<8x128xf32>
    %485 = vector.broadcast %478 : f32 to vector<8x128xf32>
    %486 = arith.addf %484, %485 : vector<8x128xf32>
    %487 = math.tanh %486 : vector<8x128xf32>
    %488 = vector.broadcast %479 : f32 to vector<8x128xf32>
    %489 = arith.mulf %487, %488 : vector<8x128xf32>
    %490 = arith.addf %475, %489 : vector<8x128xf32>
    %491 = arith.negf %490 : vector<8x128xf32>
    %492 = math.exp %491 : vector<8x128xf32>
    %cst = arith.constant 1.000000e+00 : f32
    %493 = vector.broadcast %cst : f32 to vector<8x128xf32>
    %494 = arith.addf %493, %492 : vector<8x128xf32>
    %495 = arith.divf %493, %494 : vector<8x128xf32>
    %c0_6 = arith.constant 0 : index
    %c0_7 = arith.constant 0 : index
    %496 = vector.load %arg3[%c0_6, %c0_7] : memref<8x128xf32, #tpu.memory_space<vmem>>, vector<8x128xf32>
    tpu.vector_store %arg3[%c0_6, %c0_7], %495 {strides = array<i32>} : memref<8x128xf32, #tpu.memory_space<vmem>>, vector<8x128xf32>,
    return
  }
  func.func @transform_0(%arg0: i32) -> i32 {
    %c0_i32 = arith.constant 0 : i32
    %c0_i32_0 = arith.constant 0 : i32
    return %c0_i32 : i32
  }
  func.func @transform_1(%arg0: i32) -> (i32, i32, i32) {
    %c0_i32 = arith.constant 0 : i32
    %c0_i32_0 = arith.constant 0 : i32
    %c0_i32_1 = arith.constant 0 : i32
    return %c0_i32, %arg0, %c0_i32_0 : i32, i32, i32
  }
  func.func @transform_2(%arg0: i32) -> (i32, i32) {
    %c0_i32 = arith.constant 0 : i32
    %c0_i32_0 = arith.constant 0 : i32
    return %arg0, %c0_i32 : i32, i32
  }
}

</mosaic_0001>

<bundles_post_ra>
// kernel: polarnet_forward.1
= control target key start
LH: loop header
LB: loop body
LE: loop exit
PB: predicated region body
PF: predicated region fallthrough
CT: control target
= control target key end

     0   :  { %s2054_s0 = inlined_call_operand.vmem [shape: f32[129], index: 0, kind: input, shape index: {}]   ;;  %s2055_s1 = inlined_call_operand.vmem [shape: f32[2,16,128], index: 1, kind: input, shape index: {}]   ;;  %s2056_s2 = inlined_call_operand.hbm [shape: f32[16,128], index: 2, kind: output, shape index: {}]  }
   0x1   :  { %2102 = sst [smem:[#allocation47_spill]] %s2054_s0 }
   0x2   :  { %2103 = sst [smem:[#allocation48_spill]] %s2055_s1 }
   0x3   :  { %2104 = sst [smem:[#allocation49_spill]] %s2056_s2 }
   0x4   :  { %7 = vsyncpa [#allocation4], 0 }
   0x5   :  { %8 = vsyncpa [#allocation3], 0 }
   0x6   :  { %10 = vsyncpa [#allocation3 + $0x1], 0  ;;  %s1237_s9 = smov 0   ;;  %s1239_s10 = smov 0  }
   0x7   :  { %s1241_s11 = smov 0   ;;  %s1243_s12 = smov 0  }
   0x8 LB: > { %2105 = sst [smem:[#allocation9_spill]] %s1205_s9  ;;  %s1258_s13 = sadd.s32 4294967295, %s1217_s12   ;;  %s1217_s12 = sphi %s1243_s12, %s2215_s12   ;;  %s1213_s11 = sphi %s1241_s11, %s2218_s11   ;;  %s1209_s10 = sphi %s1239_s10, %s2217_s10   ;;  %s1205_s9 = sphi %s1237_s9, %s2216_s9  }
   0x9   : > { %2106 = sst [smem:[#allocation10_spill]] %s1209_s10  ;;  %s868_s14 = sadd.s32 4294967294, %s1217_s12  }
   0xa   : > { %2107 = sst [smem:[#allocation11_spill]] %s1213_s11  ;;  %s1262_s15 = sadd.s32 1, %s1217_s12  }
   0xb   : > { %2108 = sst [smem:[#allocation12_spill]] %s1217_s12  ;;  %s44_s16 = sadd.s32 1, %s1213_s11 }
   0xc   : > { %2109 = sst [smem:[#allocation13_spill]] %s1258_s13  ;;  %s41_s17 = ssub.s32 %s1217_s12, %s1262_s15 }
   0xd   : > { %2110 = sst [smem:[#allocation14_spill]] %s1262_s15  ;;  %p51_p0 = scmp.ne.s32.totalorder %s1213_s11, %s1209_s10 }
   0xe   : > { %p42_p1 = scmp.eq.s32.totalorder %s41_s17, 0  ;;  %p52_p2 = scmp.eq.s32.totalorder %s1217_s12, 0 }
   0xf   : > { %p81_p3 = scmp.eq.s32.totalorder %s1258_s13, 1  ;;  %p86_p4 = scmp.ne.s32.totalorder %s1209_s10, %s1205_s9 }
  0x10   : > { %s1274_s18 = scalar_select %p42_p1, %s1213_s11, %s44_s16  }
  0x11   : > { %p1276_p5 = por %p52_p2, %p51_p0  ;;  %p1280_p6 = por %p81_p3, %p51_p0 }
  0x12   : > { %2111 = sst [smem:[#allocation15_spill]] %s1274_s18  ;;  %p87_p7 = scmp.eq.s32.totalorder %s868_s14, 1 }
  0x13   : > { %s2113_s20 = scalar_select %p1280_p6, 1, 0 }
  0x14   : > { %p869_p8 = scmp.ge.s32.totalorder %s1217_s12, 1  ;;  %p94_p9 = scmp.lt.s32.totalorder %s1217_s12, 3 }
  0x15   : > { %2114 = sst [smem:[#allocation16_spill]] %s2113_s20  ;;  %p1286_p10 = por %p87_p7, %p86_p4 }
  0x16   : > { %p1026_p11 = scmp.eq.s32.totalorder %s1258_s13, 0  ;;  %p1291_p12 = pnand %p869_p8, %p94_p9 }
  0x17   : > { %s2115_s21 = scalar_select %p1286_p10, 1, 0 }
  0x18   : > { %s2118_s0 = sld [smem:[#allocation47_spill]]  ;;  %p1018_p13 = pneg %p1291_p12 }
  0x19   : > { %2116 = sst [smem:[#allocation17_spill]] %s2115_s21  ;;  %s1219_s26 = smov [#allocation2]  }
  0x1a   : > { %p1019_p0 = pnand %p1026_p11, %p1018_p13  ;;  %p871_p1 = scmp.ge.s32.totalorder %s1217_s12, 2 }
  0x1c   : > { %113 = sbr.rel (%p871_p1) target bundleno = 45 (0x2d), region = 20 }
  0x1e   : > { %s106_s25 = sshll.u32 %s2118_s0, 4  ;;  %s107_s25 = int_to_ptr.vmem [resolvable:$true] %s106_s25 }
  0x1f   : > { %1021 = dma.vmem_to_smem (!%p1019_p0), %s107_s25, 32, %s1219_s26, [#allocation4]  }
  0x21   : > { %116 = sbr.rel (!%p1276_p5) target bundleno = 45 (0x2d), region = 24  ;;  %s118_s27 = sand.u32 (%p1276_p5), 1, %s1213_s11  }
  0x22   : > { %s873_s28 = sshll.u32 (%p1276_p5), %s1217_s12, 3  ;;  %s872_s29 = sshll.u32 (%p1276_p5), %s118_s27, 4 }
  0x23   : > { %s2119_s1 = sld [smem:[#allocation48_spill]] (%p1276_p5)  ;;  %s120_s5 = scalar_lea.vmem (%p1276_p5), [#allocation5], %s872_s29 }
  0x29   : > { %s122_s4 = scalar_lea.vmem %s2119_s1, %s873_s28 }
  0x2a   : > { %v153_v0 = vld [vmem:[%s122_s4] sm:$0xff]  ;;  %v155_v1 = vld [vmem:[%s122_s4 + $0x10] sm:$0xff] }
  0x2b   : > { %154 = vst [vmem:[%s120_s5] sm:$0xff] %v153_v0 }
  0x2c   : > { %156 = vst [vmem:[%s120_s5 + $0x8] sm:$0xff] %v155_v1 }
  0x2d PF: > { %165 = sbr.rel (%p1291_p12) target bundleno = 294 (0x126), region = 62 }
  0x32   : > { %1196 = dma.done.wait (%p1026_p11), [#allocation4], 32  }
  0x33   : > { %1198 = vsyncadd (%p1026_p11), [#allocation4], 4294967264  ;;  %s1319_s6 = sand.u32 1, %s1209_s10  }
  0x34   : > { %2120 = sst [smem:[#allocation18_spill]] %s1319_s6  ;;  %s876_s7 = sshll.u32 %s1319_s6, 4 }
  0x35   : > { %s175_s8 = scalar_lea.vmem [#allocation5], %s876_s7 }
  0x36   : > { %179 = sfence }
  0x37   : > { %v1322_v2 = vld [vmem:[%s175_s8] sm:$0xff]  ;;  %v1324_v3 = vld [vmem:[%s175_s8 + $0x8] sm:$0xff]  ;;  %s1334_s14 = sld [smem:[#allocation2 + $0x80]]  ;;  %v1220_v48 = vmov 0.0   ;;  %v1221_v51 = vmov 0.7853982  }
  0x38   : > { %v1327_v4 = vand.u32 2147483647, %v1322_v2  ;;  %v1330_v5 = vand.u32 2147483647, %v1324_v3  ;;  %v198_v7 = vmul.f32 %v1322_v2, %v1322_v2  ;;  %v199_v8 = vmul.f32 %v1324_v3, %v1324_v3  ;;  %s1340_s16 = sld [smem:[#allocation2]] }
  0x39   : > { %s1342_s17 = sld [smem:[#allocation2 + $0x20]]  ;;  %vm260_vm4 = vcmp.ne.f32.partialorder %v1322_v2, %v1322_v2  ;;  %vm261_vm5 = vcmp.ne.f32.partialorder %v1324_v3, %v1324_v3  ;;  %vm256_vm12 = vcmp.lt.s32.totalorder %v1322_v2, 0  ;;  %vm253_vm13 = vcmp.lt.f32.partialorder %v1322_v2, 0.0 }
  0x3a   : > { %v216_v6 = vmax.f32 %v1327_v4, %v1330_v5  ;;  %s1344_s19 = sld [smem:[#allocation2 + $0x40]]  ;;  %v1348_v9 = vadd.f32 %v199_v8, %v198_v7  ;;  %v215_v17 = vmin.f32 %v1327_v4, %v1330_v5  ;;  %vm1417_vm6 = vmor %vm260_vm4, %vm261_vm5  ;;  %vm266_vm7 = vcmp.eq.s32.totalorder %v1327_v4, inf }
  0x3b   : > { %s1346_s22 = sld [smem:[#allocation2 + $0x60]]  ;;  %vm267_vm8 = vcmp.eq.s32.totalorder %v1330_v5, inf  ;;  %v1472_v49 = vsel %vm256_vm12, 3.1415927, %v1220_v48  ;;  %vm250_vm14 = vcmp.gt.f32.partialorder %v1330_v5, %v1327_v4  ;;  %v1481_v52 = vsel %vm253_vm13, 2.3561945, %v1221_v51 }
  0x3c   : > { %1064 = vrcp.f32 %v216_v6  ;;  %s1350_s23 = sld [smem:[#allocation2 + $0x1]]  ;;  %v228_v12 = vand.u32 2147483648, %v216_v6  ;;  %vm222_vm0 = vweird.f32 %v216_v6  ;;  %v226_v14 = vand.u32 2147483647, %v216_v6  ;;  %vm1425_vm9 = vmand %vm266_vm7, %vm267_vm8 }
  0x3d   : > { %2121 = sst [smem:[#allocation19_spill]] %s1334_s14  ;;  %1066 = vrsqrt.f32 %v1348_v9  ;;  %vm208_vm10 = vcmp.eq.f32.partialorder %v1348_v9, inf  ;;  %v211_v42 = vand.u32 2147483648, %v1348_v9  ;;  %vm210_vm11 = vcmp.eq.f32.partialorder %v1348_v9, 0.0 }
  0x3e   : > { %s1352_s24 = sld [smem:[#allocation2 + $0x21]]  ;;  %v229_v16 = vor.u32 1.1754944e-38, %v228_v12  ;;  %vm227_vm3 = vcmp.eq.f32.partialorder %v226_v14, 8.507059e+37  ;;  %v279_v50 = vstv %s1340_s16  ;;  %v271_v53 = vand.u32 2147483648, %v1324_v3 }
  0x3f   : > { %s1354_s25 = sld [smem:[#allocation2 + $0x41]]  ;;  %v274_v56 = vstv %s1334_s14  ;;  %v281_v57 = vstv %s1342_s17  ;;  %vm258_vm15 = vcmp.eq.f32.partialorder %v1324_v3, 0.0 }
  0x40   : > { %2122 = sst [smem:[#allocation20_spill]] %s1344_s19  ;;  %v284_v60 = vstv %s1344_s19 }
  0x41   : > { %2123 = sst [smem:[#allocation21_spill]] %s1346_s22  ;;  %v287_v12 = vstv %s1346_s22 }
  0x42   : > { %v1065_v10 = vpop.eup %1064  ;;  %s1356_s26 = sld [smem:[#allocation2 + $0x61]]  ;;  %v294_v54 = vstv %s1350_s23 }
  0x43   : > { %v218_v11 = vmul.f32 %v1065_v10, %v216_v6  ;;  %s1359_s27 = sld [smem:[#allocation2 + $0x2]]  ;;  %vm223_vm1 = vweird.f32 %v1065_v10  ;;  %v1067_v19 = vpop.eup %1066 }
  0x44   : > { %s1361_s28 = sld [smem:[#allocation2 + $0x22]]  ;;  %vm224_vm2 = vmor %vm222_vm0, %vm223_vm1  ;;  %v202_v22 = vmul.f32 %v1067_v19, %v1348_v9  ;;  %v296_v61 = vstv %s1352_s24 }
  0x45   : > { %2124 = sst [smem:[#allocation22_spill]] %s1354_s25  ;;  %v219_v13 = vsub.f32 1.0, %v218_v11  ;;  %v299_v7 = vstv %s1354_s25 }
  0x46   : > { %s1363_s29 = sld [smem:[#allocation2 + $0x42]]  ;;  %v203_v25 = vmul.f32 %v1067_v19, %v202_v22 }
  0x47   : > { %v220_v15 = vmul.f32 %v1065_v10, %v219_v13  ;;  %s1365_s30 = sld [smem:[#allocation2 + $0x62]] }
  0x48   : > { %2125 = sst [smem:[#allocation23_spill]] %s1356_s26  ;;  %v204_v28 = vmul.f32 0.5, %v203_v25 }
  0x49   : > { %s1367_s3 = sld [smem:[#allocation2 + $0x3]]  ;;  %v221_v18 = vadd.f32 %v1065_v10, %v220_v15  ;;  %v309_v58 = vstv %s1359_s27 }
  0x4a   : > { %s1371_s4 = sld [smem:[#allocation2 + $0x23]]  ;;  %v205_v31 = vsub.f32 1.5, %v204_v28  ;;  %v311_v1 = vstv %s1361_s28  ;;  %v302_v28 = vstv %s1356_s26 }
  0x4b   : > { %s1373_s5 = sld [smem:[#allocation2 + $0x43]]  ;;  %v225_v20 = vsel %vm224_vm2, %v1065_v10, %v221_v18 }
  0x4c   : > { %2126 = sst [smem:[#allocation24_spill]] %s1363_s29  ;;  %v230_v21 = vsel %vm227_vm3, %v229_v16, %v225_v20  ;;  %v206_v36 = vmul.f32 %v1067_v19, %v205_v31  ;;  %v314_v15 = vstv %s1363_s29 }
  0x4d   : > { %2127 = sst [smem:[#allocation25_spill]] %s1365_s30  ;;  %v1380_v23 = vmul.f32 %v230_v21, %v215_v17 }
  0x4e   : > { %s1375_s7 = sld [smem:[#allocation2 + $0x63]]  ;;  %v207_v39 = vmul.f32 %v206_v36, %v1348_v9 }
  0x4f   : > { %s1377_s8 = sld [smem:[#allocation2 + $0x4]]  ;;  %v1388_v24 = vmul.f32 %v1380_v23, %v1380_v23  ;;  %v324_v62 = vstv %s1367_s3 }
  0x50   : > { %s1382_s0 = sld [smem:[#allocation2 + $0x24]]  ;;  %v209_v43 = vsel %vm208_vm10, %v1348_v9, %v207_v39  ;;  %v326_v9 = vstv %s1371_s4 }
  0x51   : > { %2128 = sst [smem:[#allocation26_spill]] %s1373_s5  ;;  %v233_v26 = vmul.f32 0.002785687, %v1388_v24  ;;  %v1466_v46 = vsel %vm210_vm11, %v211_v42, %v209_v43  ;;  %v329_v16 = vstv %s1373_s5 }
  0x52   : > { %s1384_s1 = sld [smem:[#allocation2 + $0x44]]  ;;  %v1493_v59 = vmul.f32 %v279_v50, %v1466_v46  ;;  %v1502_v0 = vmul.f32 %v294_v54, %v1466_v46  ;;  %v1511_v8 = vmul.f32 %v309_v58, %v1466_v46  ;;  %v1520_v13 = vmul.f32 %v324_v62, %v1466_v46 }
  0x53   : > { %s1390_s18 = sld [smem:[#allocation2 + $0x64]]  ;;  %v234_v27 = vadd.f32 -0.015866, %v233_v26 }
  0x54   : > { %2129 = sst [smem:[#allocation27_spill]] %s1375_s7 }
  0x55   : > { %s1392_s11 = sld [smem:[#allocation2 + $0x5]]  ;;  %v235_v29 = vmul.f32 %v234_v27, %v1388_v24  ;;  %v339_v6 = vstv %s1377_s8 }
  0x56   : > { %s1395_s10 = sld [smem:[#allocation2 + $0x25]]  ;;  %v1528_v17 = vmul.f32 %v339_v6, %v1466_v46  ;;  %v341_v18 = vstv %s1382_s0 }
  0x57   : > { %s1397_s15 = sld [smem:[#allocation2 + $0x45]]  ;;  %v236_v30 = vadd.f32 0.04247222, %v235_v29 }
  0x58   : > { %2130 = sst [smem:[#allocation28_spill]] %s1384_s1 }
  0x59   : > { %2131 = sst [smem:[#allocation29_spill]] %s1390_s18  ;;  %v237_v32 = vmul.f32 %v236_v30, %v1388_v24 }
  0x5a   : > { %s1399_s12 = sld [smem:[#allocation2 + $0x65]] }
  0x5b   : > { %s1401_s21 = sld [smem:[#allocation2 + $0x6]]  ;;  %v238_v35 = vadd.f32 -0.074975304, %v237_v32  ;;  %v354_v10 = vstv %s1392_s11 }
  0x5c   : > { %2132 = sst [smem:[#allocation30_spill]] %s1395_s10  ;;  %v1535_v20 = vmul.f32 %v354_v10, %v1466_v46  ;;  %v356_v21 = vstv %s1395_s10 }
  0x5d   : > { %2133 = sst [smem:[#allocation31_spill]] %s1397_s15  ;;  %v239_v37 = vmul.f32 %v238_v35, %v1388_v24 }
  0x5e   : > { %s1404_s9 = sld [smem:[#allocation2 + $0x26]] }
  0x5f   : > { %s1406_s20 = sld [smem:[#allocation2 + $0x46]]  ;;  %v240_v38 = vadd.f32 0.1064488, %v239_v37 }
  0x60   : > { %2134 = sst [smem:[#allocation32_spill]] %s1399_s12 }
  0x61   : > { %s1408_s2 = sld [smem:[#allocation2 + $0x66]]  ;;  %v241_v40 = vmul.f32 %v240_v38, %v1388_v24  ;;  %v369_v14 = vstv %s1401_s21 }
  0x62   : > { %s1414_s13 = sld [smem:[#allocation2 + $0x7]]  ;;  %v1543_v25 = vmul.f32 %v369_v14, %v1466_v46 }
  0x63   : > { %s1423_s6 = sld [smem:[#allocation2 + $0x27]]  ;;  %v242_v41 = vadd.f32 -0.14207031, %v241_v40 }
  0x64   : > { %s1431_s12 = sld [smem:[#allocation2 + $0x67]]  ;;  %v371_v26 = vstv %s1404_s9 }
  0x65   : > { %2135 = sst [smem:[#allocation33_spill]] %s1406_s20  ;;  %v243_v44 = vmul.f32 %v242_v41, %v1388_v24 }
  0x66   : > { %s1433_s18 = sld [smem:[#allocation2 + $0x8]] }
  0x67   : > { %2136 = sst [smem:[#allocation34_spill]] %s1408_s2  ;;  %v244_v45 = vadd.f32 0.19993454, %v243_v44 }
  0x68   : > { %s1429_s2 = sld [smem:[#allocation2 + $0x47]]  ;;  %v384_v22 = vstv %s1414_s13 }
  0x69   : > { %2139 = sst [smem:[#allocation35_spill]] %s1423_s6  ;;  %v245_v47 = vmul.f32 %v244_v45, %v1388_v24  ;;  %v1556_v32 = vmul.f32 %v384_v22, %v1466_v46 }
  0x6a   : > { %2143 = sst [smem:[#allocation37_spill]] %s1431_s12 }
  0x6b   : > { %s1436_s7 = sld [smem:[#allocation2 + $0x28]]  ;;  %v246_v55 = vadd.f32 -0.33333147, %v245_v47 }
  0x6c   : > { %s1438_s30 = sld [smem:[#allocation2 + $0x48]]  ;;  %v399_v27 = vstv %s1433_s18 }
  0x6d   : > { %s1440_s20 = sld [smem:[#allocation2 + $0x68]]  ;;  %v247_v63 = vmul.f32 %v246_v55, %v1388_v24  ;;  %v344_v24 = vstv %s1384_s1  ;;  %v1567_v39 = vmul.f32 %v399_v27, %v1466_v46 }
  0x6e   : > { %2142 = sst [smem:[#allocation36_spill]] %s1429_s2 }
  0x6f   : > { %s1442_s6 = sld [smem:[#allocation2 + $0x9]]  ;;  %v248_v11 = vmul.f32 %v247_v63, %v1380_v23 }
  0x70   : > { %s1446_s2 = sld [smem:[#allocation2 + $0x29]] }
  0x71   : > { %s1449_s12 = sld [smem:[#allocation2 + $0x49]]  ;;  %v249_v19 = vadd.f32 %v248_v11, %v1380_v23  ;;  %v401_v35 = vstv %s1436_s7 }
  0x72   : > { %2144 = sst [smem:[#allocation38_spill]] %s1438_s30 }
  0x73   : > { %2145 = sst [smem:[#allocation39_spill]] %s1440_s20  ;;  %v251_v23 = vsub.f32 1.5707964, %v249_v19 }
  0x74   : > { %s1451_s15 = sld [smem:[#allocation2 + $0x69]] }
  0x75   : > { %s1454_s30 = sld [smem:[#allocation2 + $0xa]]  ;;  %v414_v36 = vstv %s1442_s6  ;;  %v252_v37 = vsel %vm250_vm14, %v251_v23, %v249_v19 }
  0x76   : > { %2146 = sst [smem:[#allocation40_spill]] %s1446_s2  ;;  %v254_v41 = vsub.f32 3.1415927, %v252_v37  ;;  %v1579_v5 = vmul.f32 %v414_v36, %v1466_v46 }
  0x77   : > { %2147 = sst [smem:[#allocation41_spill]] %s1449_s12 }
  0x78   : > { %s1459_s20 = sld [smem:[#allocation2 + $0x2a]]  ;;  %v255_v48 = vsel %vm253_vm13, %v254_v41, %v252_v37 }
  0x79   : > { %s1462_s12 = sld [smem:[#allocation2 + $0x4a]]  ;;  %v259_v55 = vsel %vm258_vm15, %v1472_v49, %v255_v48 }
  0x7a   : > { %2148 = sst [smem:[#allocation42_spill]] %s1451_s15  ;;  %v263_v63 = vsel %vm1417_vm6, nan, %v259_v55 }
  0x7b   : > { %s1464_s15 = sld [smem:[#allocation2 + $0x6a]]  ;;  %v429_v40 = vstv %s1454_s30  ;;  %v269_v49 = vsel %vm1425_vm9, %v1481_v52, %v263_v63 }
  0x7c   : > { %s1468_s2 = sld [smem:[#allocation2 + $0xb]]  ;;  %v1590_v54 = vmul.f32 %v429_v40, %v1466_v46  ;;  %v270_v22 = vand.u32 2147483647, %v269_v49 }
  0x7d   : > { %s1490_s16 = sld [smem:[#allocation2 + $0x6b]] }
  0x7e   : > { %s1498_s23 = sld [smem:[#allocation2 + $0xc]]  ;;  %v431_v45 = vstv %s1459_s20  ;;  %v1636_v41 = vor.u32 %v271_v53, %v270_v22 }
  0x7f   : > { %2149 = sst [smem:[#allocation43_spill]] %s1462_s12 }
  0x80   : > { %s1475_s12 = sld [smem:[#allocation2 + $0x2b]]  ;;  %v282_v3 = vmul.f32 %v281_v57, %v1636_v41  ;;  %v297_v53 = vmul.f32 %v296_v61, %v1636_v41  ;;  %v327_v22 = vmul.f32 %v326_v9, %v1636_v41  ;;  %v357_v57 = vmul.f32 %v356_v21, %v1636_v41 }
  0x81   : > { %2150 = sst [smem:[#allocation44_spill]] %s1464_s15  ;;  %v372_v61 = vmul.f32 %v371_v26, %v1636_v41 }
  0x82   : > { %s1485_s15 = sld [smem:[#allocation2 + $0x4b]]  ;;  %v444_v47 = vstv %s1468_s2  ;;  %v283_v9 = vadd.f32 %v282_v3, %v1493_v59  ;;  %v328_v21 = vadd.f32 %v327_v22, %v1520_v13 }
  0x83   : > { %2151 = sst [smem:[#allocation45_spill]] %s1490_s16  ;;  %v1606_v10 = vmul.f32 %v444_v47, %v1466_v46  ;;  %v373_v47 = vadd.f32 %v372_v61, %v1543_v25 }
  0x84   : > { %s1506_s27 = sld [smem:[#allocation2 + $0x2c]]  ;;  %v459_v2 = vstv %s1498_s23 }
  0x85   : > { %s1515_s3 = sld [smem:[#allocation2 + $0x4c]]  ;;  %v1621_v23 = vmul.f32 %v459_v2, %v1466_v46 }
  0x86   : > { %s1523_s8 = sld [smem:[#allocation2 + $0x6c]]  ;;  %v446_v62 = vstv %s1475_s12 }
  0x87   : > { %s2153_s14 = sld [smem:[#allocation31_spill]] }
  0x88   : > { %s2154_s11 = sld [smem:[#allocation35_spill]]  ;;  %v449_v27 = vstv %s1485_s15 }
  0x89   : > { %s1531_s16 = sld [smem:[#allocation2 + $0xd]] }
  0x8a   : > { %s2155_s22 = sld [smem:[#allocation33_spill]]  ;;  %v461_v19 = vstv %s1506_s27 }
  0x8b   : > { %s1539_s21 = sld [smem:[#allocation2 + $0x2d]]  ;;  %v464_v52 = vstv %s1515_s3 }
  0x8c   : > { %2152 = sst [smem:[#allocation46_spill]] %s1523_s8 }
  0x8d   : > { %s2156_s8 = sld [smem:[#allocation25_spill]]  ;;  %v359_v29 = vstv %s2153_s14 }
  0x8e   : > { %s1547_s5 = sld [smem:[#allocation2 + $0x4d]]  ;;  %v386_v30 = vstv %s2154_s11 }
  0x8f   : > { %s2157_s29 = sld [smem:[#allocation27_spill]]  ;;  %v474_v11 = vstv %s1531_s16 }
  0x90   : > { %s2158_s25 = sld [smem:[#allocation36_spill]]  ;;  %v374_v31 = vstv %s2155_s22  ;;  %v1629_v37 = vmul.f32 %v474_v11, %v1466_v46 }
  0x91   : > { %s2159_s19 = sld [smem:[#allocation40_spill]]  ;;  %v476_v36 = vstv %s1539_s21 }
  0x92   : > { %s1552_s13 = sld [smem:[#allocation2 + $0xe]] }
  0x93   : > { %s2160_s10 = sld [smem:[#allocation38_spill]]  ;;  %v317_v38 = vstv %s2156_s8 }
  0x94   : > { %s1560_s18 = sld [smem:[#allocation2 + $0x6d]]  ;;  %v479_v63 = vstv %s1547_s5 }
  0x95   : > { %s2162_s26 = sld [smem:[#allocation29_spill]]  ;;  %v332_v42 = vstv %s2157_s29 }
  0x96   : > { %s2163_s14 = sld [smem:[#allocation41_spill]]  ;;  %v389_v43 = vstv %s2158_s25 }
  0x97   : > { %s1570_s22 = sld [smem:[#allocation2 + $0xf]]  ;;  %v416_v44 = vstv %s2159_s19 }
  0x98   : > { %s2164_s1 = sld [smem:[#allocation32_spill]]  ;;  %v489_v33 = vstv %s1552_s13 }
  0x99   : > { %s1575_s6 = sld [smem:[#allocation2 + $0x2e]]  ;;  %v404_v4 = vstv %s2160_s10  ;;  %v1640_v48 = vmul.f32 %v489_v33, %v1466_v46  ;;  %v312_v33 = vmul.f32 %v311_v1, %v1636_v41  ;;  %v387_v1 = vmul.f32 %v386_v30, %v1636_v41 }
  0x9a   : > { %2161 = sst [smem:[#allocation35_spill]] %s1560_s18  ;;  %v358_v30 = vadd.f32 %v357_v57, %v1535_v20  ;;  %v330_v20 = vadd.f32 %v329_v16, %v328_v21 }
  0x9b   : > { %s2165_s18 = sld [smem:[#allocation43_spill]]  ;;  %v347_v50 = vstv %s2162_s26  ;;  %v313_v2 = vadd.f32 %v312_v33, %v1511_v8  ;;  %v388_v3 = vadd.f32 %v387_v1, %v1556_v32  ;;  %v447_v32 = vmul.f32 %v446_v62, %v1636_v41 }
  0x9c   : > { %s1583_s30 = sld [smem:[#allocation2 + $0x2f]]  ;;  %v419_v51 = vstv %s2163_s14  ;;  %v360_v16 = vadd.f32 %v359_v29, %v358_v30  ;;  %v462_v62 = vmul.f32 %v461_v19, %v1636_v41  ;;  %v477_v19 = vmul.f32 %v476_v36, %v1636_v41 }
  0x9d   : > { %s2166_s29 = sld [smem:[#allocation34_spill]]  ;;  %v504_v40 = vstv %s1570_s22  ;;  %v315_v13 = vadd.f32 %v314_v15, %v313_v2  ;;  %v432_v15 = vmul.f32 %v431_v45, %v1636_v41  ;;  %v390_v29 = vadd.f32 %v389_v43, %v388_v3 }
  0x9e   : > { %s1592_s8 = sld [smem:[#allocation2 + $0x4e]]  ;;  %v362_v58 = vstv %s2164_s1  ;;  %v1648_v11 = vmul.f32 %v504_v40, %v1466_v46  ;;  %v342_v40 = vmul.f32 %v341_v18, %v1636_v41  ;;  %v298_v18 = vadd.f32 %v297_v53, %v1502_v0 }
  0x9f   : > { %s1600_s2 = sld [smem:[#allocation2 + $0x6e]]  ;;  %v491_v55 = vstv %s1575_s6  ;;  %v285_v0 = vadd.f32 %v284_v60, %v283_v9  ;;  %v402_v60 = vmul.f32 %v401_v35, %v1636_v41  ;;  %v433_v45 = vadd.f32 %v432_v15, %v1590_v54 }
  0xa0   : > { %s2168_s26 = sld [smem:[#allocation37_spill]]  ;;  %v343_v26 = vadd.f32 %v342_v40, %v1528_v17  ;;  %v300_v8 = vadd.f32 %v299_v7, %v298_v18  ;;  %v417_v7 = vmul.f32 %v416_v44, %v1636_v41  ;;  %v492_v33 = vmul.f32 %v491_v55, %v1636_v41 }
  0xa1   : > { %v434_v6 = vstv %s2165_s18  ;;  %s1609_s14 = sld [smem:[#allocation2 + $0x4f]]  ;;  %1068 = vtanh.f32 %v285_v0  ;;  %v403_v35 = vadd.f32 %v402_v60, %v1567_v39  ;;  %v478_v22 = vadd.f32 %v477_v19, %v1629_v37 }
  0xa2   : > { %s1617_s1 = sld [smem:[#allocation2 + $0x6f]]  ;;  %v506_v49 = vstv %s1583_s30  ;;  %v345_v25 = vadd.f32 %v344_v24, %v343_v26  ;;  %1070 = vtanh.f32 %v300_v8  ;;  %v375_v24 = vadd.f32 %v374_v31, %v373_v47 }
  0xa3   : > { %v377_v14 = vstv %s2166_s29  ;;  %s1624_s16 = sld [smem:[#allocation2 + $0x10]]  ;;  %1072 = vtanh.f32 %v315_v13  ;;  %v418_v44 = vadd.f32 %v417_v7, %v1579_v5  ;;  %v448_v31 = vadd.f32 %v447_v32, %v1606_v10 }
  0xa4   : > { %s1632_s13 = sld [smem:[#allocation2 + $0x30]]  ;;  %v494_v59 = vstv %s1592_s8  ;;  %1074 = vtanh.f32 %v330_v20  ;;  %v405_v39 = vadd.f32 %v404_v4, %v403_v35  ;;  %v463_v10 = vadd.f32 %v462_v62, %v1621_v23 }
  0xa5   : > { %2167 = sst [smem:[#allocation36_spill]] %s1600_s2  ;;  %1076 = vtanh.f32 %v345_v25  ;;  %v420_v43 = vadd.f32 %v419_v51, %v418_v44  ;;  %v435_v4 = vadd.f32 %v434_v6, %v433_v45  ;;  %v450_v2 = vadd.f32 %v449_v27, %v448_v31 }
  0xa6   : > { %v392_v34 = vstv %s2168_s26  ;;  %s1643_s26 = sld [smem:[#allocation2 + $0x50]]  ;;  %1078 = vtanh.f32 %v360_v16  ;;  %v465_v36 = vadd.f32 %v464_v52, %v463_v10  ;;  %v493_v55 = vadd.f32 %v492_v33, %v1640_v48 }
  0xa7   : > { %s1651_s22 = sld [smem:[#allocation2 + $0x70]]  ;;  %v1069_v47 = vpop.eup %1068  ;;  %1080 = vtanh.f32 %v375_v24  ;;  %v507_v40 = vmul.f32 %v506_v49, %v1636_v41  ;;  %v480_v57 = vadd.f32 %v479_v63, %v478_v22  ;;  %v509_v63 = vstv %s1609_s14 }
  0xa8   : > { %s1665_s2 = sld [smem:[#allocation2 + $0x11]]  ;;  %v1071_v51 = vpop.eup %1070  ;;  %v288_v23 = vmul.f32 %v1069_v47, %v287_v12  ;;  %1082 = vtanh.f32 %v390_v29  ;;  %v495_v49 = vadd.f32 %v494_v59, %v493_v55  ;;  %v512_v13 = vstv %s1617_s1 }
  0xa9   : > { %s1679_s28 = sld [smem:[#allocation2 + $0x31]]  ;;  %v519_v17 = vstv %s1624_s16  ;;  %v1073_v6 = vpop.eup %1072  ;;  %v303_v27 = vmul.f32 %v1071_v51, %v302_v28  ;;  %1084 = vtanh.f32 %v405_v39  ;;  %v508_v61 = vadd.f32 %v507_v40, %v1648_v11 }
  0xaa   : > { %s1685_s9 = sld [smem:[#allocation2 + $0x51]]  ;;  %v521_v53 = vstv %s1632_s13  ;;  %v1075_v12 = vpop.eup %1074  ;;  %v289_v52 = vadd.f32 %v288_v23, %v274_v56  ;;  %v318_v37 = vmul.f32 %v1073_v6, %v317_v38  ;;  %1086 = vtanh.f32 %v420_v43 }
  0xab   : > { %s1691_s29 = sld [smem:[#allocation2 + $0x71]]  ;;  %v1077_v28 = vpop.eup %1076  ;;  %1088 = vtanh.f32 %v435_v4  ;;  %v333_v1 = vmul.f32 %v1075_v12, %v332_v42  ;;  %v510_v11 = vadd.f32 %v509_v63, %v508_v61  ;;  %v520_v59 = vmul.f32 %v519_v17, %v1466_v46 }
  0xac   : > { %s1719_s23 = sld [smem:[#allocation2 + $0x52]]  ;;  %v1079_v56 = vpop.eup %1078  ;;  %v304_v38 = vadd.f32 %v303_v27, %v289_v52  ;;  %1090 = vtanh.f32 %v450_v2  ;;  %v348_v42 = vmul.f32 %v1077_v28, %v347_v50  ;;  %v522_v20 = vmul.f32 %v521_v53, %v1636_v41 }
  0xad   : > { %2172 = sst [smem:[#allocation40_spill]] %s1651_s22  ;;  %v1081_v9 = vpop.eup %1080  ;;  %1092 = vtanh.f32 %v465_v36  ;;  %v363_v8 = vmul.f32 %v1079_v56, %v362_v58  ;;  %v524_v17 = vstv %s1643_s26 }
  0xae   : > { %s2182_s17 = sld [smem:[#allocation44_spill]]  ;;  %v1083_v26 = vpop.eup %1082  ;;  %v319_v30 = vadd.f32 %v318_v37, %v304_v38  ;;  %1094 = vtanh.f32 %v480_v57  ;;  %v378_v3 = vmul.f32 %v1081_v9, %v377_v14  ;;  %v523_v7 = vadd.f32 %v522_v20, %v520_v59 }
  0xaf   : > { %s2183_s7 = sld [smem:[#allocation45_spill]]  ;;  %v1085_v0 = vpop.eup %1084  ;;  %1096 = vtanh.f32 %v495_v49  ;;  %v393_v58 = vmul.f32 %v1083_v26, %v392_v34  ;;  %v534_v15 = vstv %s1665_s2  ;;  %v536_v53 = vstv %s1679_s28 }
  0xb0   : > { %2178 = sst [smem:[#allocation38_spill]] %s1685_s9  ;;  %v1087_v50 = vpop.eup %1086  ;;  %v334_v25 = vadd.f32 %v333_v1, %v319_v30  ;;  %1098 = vtanh.f32 %v510_v11  ;;  %v535_v35 = vmul.f32 %v534_v15, %v1466_v46  ;;  %v537_v44 = vmul.f32 %v536_v53, %v1636_v41 }
  0xb1   : > { %2179 = sst [smem:[#allocation43_spill]] %s1691_s29  ;;  %v1089_v60 = vpop.eup %1088  ;;  %v525_v31 = vadd.f32 %v524_v17, %v523_v7 }
  0xb2   : > { %s1700_s9 = sld [smem:[#allocation2 + $0x12]]  ;;  %v1091_v16 = vpop.eup %1090  ;;  %v349_v24 = vadd.f32 %v348_v42, %v334_v25  ;;  %v538_v47 = vadd.f32 %v537_v44, %v535_v35  ;;  %v554_v40 = vstv %s1719_s23 }
  0xb3   : > { %s1708_s29 = sld [smem:[#allocation2 + $0x32]]  ;;  %v1093_v34 = vpop.eup %1092  ;;  %1100 = vtanh.f32 %v525_v31 }
  0xb4   : > { %s1728_s24 = sld [smem:[#allocation2 + $0x72]]  ;;  %v437_v5 = vstv %s2182_s17  ;;  %v1095_v43 = vpop.eup %1094  ;;  %v364_v10 = vadd.f32 %v363_v8, %v349_v24 }
  0xb5   : > { %s1733_s19 = sld [smem:[#allocation2 + $0x13]]  ;;  %v452_v54 = vstv %s2183_s7  ;;  %v438_v19 = vmul.f32 %v1089_v60, %v437_v5  ;;  %v1097_v2 = vpop.eup %1096 }
  0xb6   : > { %s1741_s12 = sld [smem:[#allocation2 + $0x33]]  ;;  %v453_v33 = vmul.f32 %v1091_v16, %v452_v54  ;;  %v1099_v22 = vpop.eup %1098  ;;  %v379_v6 = vadd.f32 %v378_v3, %v364_v10 }
  0xb7   : > { %s1747_s4 = sld [smem:[#allocation2 + $0x53]] }
  0xb8   : > { %s1755_s27 = sld [smem:[#allocation2 + $0x73]]  ;;  %v549_v4 = vstv %s1700_s9  ;;  %v394_v52 = vadd.f32 %v393_v58, %v379_v6 }
  0xb9   : > { %s1764_s11 = sld [smem:[#allocation2 + $0x14]]  ;;  %v550_v23 = vmul.f32 %v549_v4, %v1466_v46  ;;  %v551_v36 = vstv %s1708_s29 }
  0xba   : > { %s2189_s21 = sld [smem:[#allocation46_spill]]  ;;  %v552_v55 = vmul.f32 %v551_v36, %v1636_v41  ;;  %v557_v49 = vstv %s1728_s24 }
  0xbb   : > { %s1771_s18 = sld [smem:[#allocation2 + $0x34]]  ;;  %v564_v12 = vstv %s1733_s19 }
  0xbc   : > { %s1779_s6 = sld [smem:[#allocation2 + $0x54]]  ;;  %v553_v57 = vadd.f32 %v552_v55, %v550_v23  ;;  %v565_v28 = vmul.f32 %v564_v12, %v1466_v46  ;;  %v566_v61 = vstv %s1741_s12 }
  0xbd   : > { %s2191_s3 = sld [smem:[#allocation35_spill]]  ;;  %v567_v63 = vmul.f32 %v566_v61, %v1636_v41  ;;  %v569_v9 = vstv %s1747_s4 }
  0xbe   : > { %s1787_s20 = sld [smem:[#allocation2 + $0x74]]  ;;  %v555_v1 = vadd.f32 %v554_v40, %v553_v57  ;;  %v572_v42 = vstv %s1755_s27 }
  0xbf   : > { %s2192_s22 = sld [smem:[#allocation36_spill]]  ;;  %v579_v56 = vstv %s1764_s11  ;;  %v568_v30 = vadd.f32 %v567_v63, %v565_v28 }
  0xc0   : > { %v467_v48 = vstv %s2189_s21  ;;  %s1793_s25 = sld [smem:[#allocation2 + $0x15]] }
  0xc1   : > { %s1798_s10 = sld [smem:[#allocation2 + $0x35]]  ;;  %v468_v5 = vmul.f32 %v1093_v34, %v467_v48  ;;  %v1872_v48 = vmul.f32 %v1099_v22, %v512_v13  ;;  %v570_v3 = vadd.f32 %v569_v9, %v568_v30 }
  0xc2   : > { %s1802_s0 = sld [smem:[#allocation2 + $0x55]]  ;;  %v584_v59 = vstv %s1779_s6 }
  0xc3   : > { %v482_v18 = vstv %s2191_s3  ;;  %s1809_s15 = sld [smem:[#allocation2 + $0x75]] }
  0xc4   : > { %s2199_s3 = sld [smem:[#allocation39_spill]]  ;;  %v1859_v54 = vmul.f32 %v1095_v43, %v482_v18  ;;  %v580_v18 = vmul.f32 %v579_v56, %v1466_v46  ;;  %v587_v13 = vstv %s1787_s20 }
  0xc5   : > { %v497_v21 = vstv %s2192_s22  ;;  %s1817_s30 = sld [smem:[#allocation2 + $0x16]] }
  0xc6   : > { %s2200_s16 = sld [smem:[#allocation42_spill]]  ;;  %v1867_v37 = vmul.f32 %v1097_v2, %v497_v21  ;;  %v581_v21 = vstv %s1771_s18  ;;  %v594_v11 = vstv %s1793_s25 }
  0xc7   : > { %s2201_s5 = sld [smem:[#allocation40_spill]]  ;;  %v582_v8 = vmul.f32 %v581_v21, %v1636_v41  ;;  %v595_v20 = vmul.f32 %v594_v11, %v1466_v46 }
  0xc8   : > { %2196 = sst [smem:[#allocation30_spill]] %s1802_s0 }
  0xc9   : > { %2198 = sst [smem:[#allocation20_spill]] %s1809_s15  ;;  %v583_v60 = vadd.f32 %v582_v8, %v580_v18 }
  0xca   : > { %s1822_s15 = sld [smem:[#allocation2 + $0x36]]  ;;  %v2203_v14 = vstv %s2199_s3 }
  0xcb   : > { %s2202_s0 = sld [smem:[#allocation38_spill]]  ;;  %v408_v32 = vmul.f32 %v1085_v0, %v2203_v14  ;;  %v1101_v0 = vpop.eup %1100  ;;  %v609_v7 = vstv %s1817_s30  ;;  %v585_v35 = vadd.f32 %v584_v59, %v583_v60 }
  0xcc   : > { %s1828_s1 = sld [smem:[#allocation2 + $0x56]]  ;;  %v2205_v45 = vstv %s2200_s16  ;;  %v610_v14 = vmul.f32 %v609_v7, %v1466_v46 }
  0xcd   : > { %s2204_s26 = sld [smem:[#allocation43_spill]]  ;;  %v423_v29 = vmul.f32 %v1087_v50, %v2205_v45  ;;  %v527_v62 = vstv %s2201_s5  ;;  %v409_v38 = vadd.f32 %v408_v32, %v394_v52  ;;  %v596_v50 = vstv %s1798_s10 }
  0xce   : > { %s1834_s13 = sld [smem:[#allocation2 + $0x76]]  ;;  %v597_v17 = vmul.f32 %v596_v50, %v1636_v41  ;;  %v528_v32 = vmul.f32 %v1101_v0, %v527_v62 }
  0xcf   : > { %s1840_s2 = sld [smem:[#allocation2 + $0x17]]  ;;  %v424_v26 = vadd.f32 %v423_v29, %v409_v38 }
  0xd0   : > { %s1845_s28 = sld [smem:[#allocation2 + $0x37]]  ;;  %v611_v15 = vstv %s1822_s15  ;;  %v598_v24 = vadd.f32 %v597_v17, %v595_v20 }
  0xd1   : > { %v539_v39 = vstv %s2202_s0  ;;  %s1852_s8 = sld [smem:[#allocation2 + $0x57]]  ;;  %v439_v25 = vadd.f32 %v438_v19, %v424_v26  ;;  %v612_v44 = vmul.f32 %v611_v15, %v1636_v41 }
  0xd2   : > { %v540_v27 = vadd.f32 %v539_v39, %v538_v47  ;;  %s1857_s9 = sld [smem:[#allocation2 + $0x77]]  ;;  %v614_v34 = vstv %s1828_s1 }
  0xd3   : > { %v542_v51 = vstv %s2204_s26  ;;  %s1863_s29 = sld [smem:[#allocation2 + $0x18]]  ;;  %v454_v16 = vadd.f32 %v453_v33, %v439_v25  ;;  %v613_v10 = vadd.f32 %v612_v44, %v610_v14 }
  0xd4   : > { %s1870_s17 = sld [smem:[#allocation2 + $0x38]]  ;;  %1102 = vtanh.f32 %v540_v27  ;;  %v617_v40 = vstv %s1834_s13 }
  0xd5   : > { %s1877_s23 = sld [smem:[#allocation2 + $0x58]]  ;;  %1104 = vtanh.f32 %v555_v1  ;;  %v469_v45 = vadd.f32 %v468_v5, %v454_v16  ;;  %v624_v31 = vstv %s1840_s2  ;;  %v615_v33 = vadd.f32 %v614_v34, %v613_v10 }
  0xd6   : > { %s1880_s7 = sld [smem:[#allocation2 + $0x78]]  ;;  %1106 = vtanh.f32 %v570_v3  ;;  %v626_v39 = vstv %s1845_s28  ;;  %v625_v62 = vmul.f32 %v624_v31, %v1466_v46 }
  0xd7   : > { %s1886_s19 = sld [smem:[#allocation2 + $0x19]]  ;;  %1108 = vtanh.f32 %v585_v35  ;;  %v484_v47 = vadd.f32 %v1859_v54, %v469_v45  ;;  %v627_v2 = vmul.f32 %v626_v39, %v1636_v41  ;;  %v629_v23 = vstv %s1852_s8 }
  0xd8   : > { %s2206_s12 = sld [smem:[#allocation30_spill]] }
  0xd9   : > { %s1890_s11 = sld [smem:[#allocation2 + $0x39]]  ;;  %v639_v36 = vstv %s1863_s29  ;;  %v499_v5 = vadd.f32 %v1867_v37, %v484_v47  ;;  %v628_v27 = vadd.f32 %v627_v2, %v625_v62 }
  0xda   : > { %s1896_s4 = sld [smem:[#allocation2 + $0x59]]  ;;  %v1103_v53 = vpop.eup %1102  ;;  %v641_v22 = vstv %s1870_s17 }
  0xdb   : > { %s1899_s21 = sld [smem:[#allocation2 + $0x79]]  ;;  %v1105_v19 = vpop.eup %1104  ;;  %v543_v4 = vmul.f32 %v1103_v53, %v542_v51  ;;  %v640_v51 = vmul.f32 %v639_v36, %v1466_v46  ;;  %v642_v55 = vmul.f32 %v641_v22, %v1636_v41  ;;  %v644_v12 = vstv %s1877_s23 }
  0xdc   : > { %s1904_s18 = sld [smem:[#allocation2 + $0x1a]]  ;;  %v1107_v6 = vpop.eup %1106  ;;  %v558_v54 = vmul.f32 %v1105_v19, %v557_v49  ;;  %v514_v52 = vadd.f32 %v1872_v48, %v499_v5  ;;  %v630_v37 = vadd.f32 %v629_v23, %v628_v27  ;;  %v632_v49 = vstv %s1857_s9 }
  0xdd   : > { %s2207_s6 = sld [smem:[#allocation20_spill]]  ;;  %v643_v57 = vadd.f32 %v642_v55, %v640_v51  ;;  %v654_v28 = vstv %s1886_s19  ;;  %v1109_v61 = vpop.eup %1108  ;;  %v573_v56 = vmul.f32 %v1107_v6, %v572_v42  ;;  %v647_v18 = vstv %s1880_s7 }
  0xde   : > { %v599_v58 = vstv %s2206_s12  ;;  %s1907_s22 = sld [smem:[#allocation2 + $0x3a]]  ;;  %v655_v38 = vmul.f32 %v654_v28, %v1466_v46  ;;  %v529_v9 = vadd.f32 %v528_v32, %v514_v52  ;;  %v588_v60 = vmul.f32 %v1109_v61, %v587_v13 }
  0xdf   : > { %s1913_s25 = sld [smem:[#allocation2 + $0x5a]]  ;;  %v600_v29 = vadd.f32 %v599_v58, %v598_v24  ;;  %v656_v1 = vstv %s1890_s11  ;;  %v645_v48 = vadd.f32 %v644_v12, %v643_v57 }
  0xe0   : > { %s1917_s10 = sld [smem:[#allocation2 + $0x7a]]  ;;  %v657_v21 = vmul.f32 %v656_v1, %v1636_v41  ;;  %v659_v11 = vstv %s1896_s4  ;;  %v544_v42 = vadd.f32 %v543_v4, %v529_v9 }
  0xe1   : > { %s1921_s0 = sld [smem:[#allocation2 + $0x1b]]  ;;  %1110 = vtanh.f32 %v600_v29  ;;  %v662_v50 = vstv %s1899_s21 }
  0xe2   : > { %s1927_s14 = sld [smem:[#allocation2 + $0x3b]]  ;;  %1112 = vtanh.f32 %v615_v33  ;;  %v669_v26 = vstv %s1904_s18  ;;  %v658_v20 = vadd.f32 %v657_v21, %v655_v38  ;;  %v559_v17 = vadd.f32 %v558_v54, %v544_v42 }
  0xe3   : > { %v602_v43 = vstv %s2207_s6  ;;  %s1932_s15 = sld [smem:[#allocation2 + $0x5b]]  ;;  %1114 = vtanh.f32 %v630_v37  ;;  %v670_v59 = vmul.f32 %v669_v26, %v1466_v46 }
  0xe4   : > { %s1937_s3 = sld [smem:[#allocation2 + $0x7b]]  ;;  %v671_v30 = vstv %s1907_s22  ;;  %1116 = vtanh.f32 %v645_v48  ;;  %v660_v16 = vadd.f32 %v659_v11, %v658_v20  ;;  %v574_v32 = vadd.f32 %v573_v56, %v559_v17 }
  0xe5   : > { %s1943_s30 = sld [smem:[#allocation2 + $0x1c]]  ;;  %v672_v0 = vmul.f32 %v671_v30, %v1636_v41  ;;  %v674_v25 = vstv %s1913_s25 }
  0xe6   : > { %s1947_s16 = sld [smem:[#allocation2 + $0x3c]]  ;;  %1118 = vtanh.f32 %v660_v16  ;;  %v589_v39 = vadd.f32 %v588_v60, %v574_v32  ;;  %v677_v19 = vstv %s1917_s10 }
  0xe7   : > { %s1954_s24 = sld [smem:[#allocation2 + $0x5c]]  ;;  %v1111_v63 = vpop.eup %1110  ;;  %v684_v3 = vstv %s1921_s0  ;;  %v673_v58 = vadd.f32 %v672_v0, %v670_v59 }
  0xe8   : > { %s1957_s5 = sld [smem:[#allocation2 + $0x1d]]  ;;  %v1113_v8 = vpop.eup %1112  ;;  %v685_v7 = vmul.f32 %v684_v3, %v1466_v46  ;;  %v603_v15 = vmul.f32 %v1111_v63, %v602_v43  ;;  %v686_v24 = vstv %s1927_s14 }
  0xe9   : > { %s1963_s27 = sld [smem:[#allocation2 + $0x3d]]  ;;  %v618_v53 = vmul.f32 %v1113_v8, %v617_v40  ;;  %v1115_v14 = vpop.eup %1114  ;;  %v675_v35 = vadd.f32 %v674_v25, %v673_v58  ;;  %v687_v13 = vmul.f32 %v686_v24, %v1636_v41  ;;  %v689_v34 = vstv %s1932_s15 }
  0xea   : > { %s1967_s1 = sld [smem:[#allocation2 + $0x5d]]  ;;  %v1117_v31 = vpop.eup %1116  ;;  %v633_v62 = vmul.f32 %v1115_v14, %v632_v49  ;;  %v604_v2 = vadd.f32 %v603_v15, %v589_v39  ;;  %v692_v6 = vstv %s1937_s3 }
  0xeb   : > { %s1972_s26 = sld [smem:[#allocation2 + $0x1e]]  ;;  %v699_v44 = vstv %s1943_s30  ;;  %1120 = vtanh.f32 %v675_v35  ;;  %v688_v43 = vadd.f32 %v687_v13, %v685_v7  ;;  %v648_v22 = vmul.f32 %v1117_v31, %v647_v18 }
  0xec   : > { %s1977_s13 = sld [smem:[#allocation2 + $0x3e]]  ;;  %v700_v45 = vmul.f32 %v699_v44, %v1466_v46  ;;  %v701_v29 = vstv %s1947_s16  ;;  %v619_v51 = vadd.f32 %v618_v53, %v604_v2  ;;  %v1119_v40 = vpop.eup %1118 }
  0xed   : > { %s1982_s2 = sld [smem:[#allocation2 + $0x5e]]  ;;  %v702_v10 = vmul.f32 %v701_v29, %v1636_v41  ;;  %v704_v47 = vstv %s1954_s24  ;;  %v690_v33 = vadd.f32 %v689_v34, %v688_v43  ;;  %v663_v56 = vmul.f32 %v1119_v40, %v662_v50 }
  0xee   : > { %s1986_s20 = sld [smem:[#allocation2 + $0x1f]]  ;;  %v714_v4 = vstv %s1957_s5  ;;  %v634_v61 = vadd.f32 %v633_v62, %v619_v51 }
  0xef   : > { %s1991_s28 = sld [smem:[#allocation2 + $0x3f]]  ;;  %v703_v23 = vadd.f32 %v702_v10, %v700_v45  ;;  %v715_v36 = vmul.f32 %v714_v4, %v1466_v46  ;;  %v716_v5 = vstv %s1963_s27  ;;  %1122 = vtanh.f32 %v690_v33 }
  0xf0   : > { %s1997_s8 = sld [smem:[#allocation2 + $0x5f]]  ;;  %v717_v54 = vmul.f32 %v716_v5, %v1636_v41  ;;  %v719_v12 = vstv %s1967_s1  ;;  %v649_v48 = vadd.f32 %v648_v22, %v634_v61 }
  0xf1   : > { %s1999_s9 = sld [smem:[#allocation2 + $0x7c]]  ;;  %v729_v27 = vstv %s1972_s26  ;;  %v705_v55 = vadd.f32 %v704_v47, %v703_v23  ;;  %v1121_v28 = vpop.eup %1120 }
  0xf2   : > { %v730_v52 = vmul.f32 %v729_v27, %v1466_v46  ;;  %v731_v37 = vstv %s1977_s13  ;;  %s2010_s29 = sld [smem:[#allocation2 + $0x7d]]  ;;  %v718_v49 = vadd.f32 %v717_v54, %v715_v36  ;;  %v678_v38 = vmul.f32 %v1121_v28, %v677_v19 }
  0xf3   : > { %v734_v57 = vstv %s1982_s2  ;;  %1124 = vtanh.f32 %v705_v55  ;;  %v732_v1 = vmul.f32 %v731_v37, %v1636_v41  ;;  %s1002_s17 = sld [smem:[#allocation2 + $0x7e]]  ;;  %v664_v59 = vadd.f32 %v663_v56, %v649_v48 }
  0xf4   : > { %v744_v63 = vstv %s1986_s20  ;;  %v720_v18 = vadd.f32 %v719_v12, %v718_v49  ;;  %s1006_s23 = sld [smem:[#allocation2 + $0x7f]] }
  0xf5   : > { %v746_v9 = vstv %s1991_s28  ;;  %v745_v21 = vmul.f32 %v744_v63, %v1466_v46  ;;  %v733_v26 = vadd.f32 %v732_v1, %v730_v52  ;;  %v1123_v42 = vpop.eup %1122  ;;  %v679_v3 = vadd.f32 %v678_v38, %v664_v59  ;;  %s2208_s7 = sld [smem:[#allocation18_spill]] }
  0xf6   : > { %v747_v11 = vmul.f32 %v746_v9, %v1636_v41  ;;  %v749_v30 = vstv %s1997_s8  ;;  %1126 = vtanh.f32 %v720_v18  ;;  %v693_v20 = vmul.f32 %v1123_v42, %v692_v6  ;;  %s2209_s19 = sld [smem:[#allocation13_spill]] }
  0xf7   : > { %v707_v0 = vstv %s1999_s9  ;;  %v735_v50 = vadd.f32 %v734_v57, %v733_v26  ;;  %s2210_s18 = sld [smem:[#allocation49_spill]] }
  0xf8   : > { %v748_v8 = vadd.f32 %v747_v11, %v745_v21  ;;  %v694_v46 = vadd.f32 %v693_v20, %v679_v3  ;;  %v722_v58 = vstv %s2010_s29 }
  0xf9   : > { %v1125_v25 = vpop.eup %1124  ;;  %1128 = vtanh.f32 %v735_v50  ;;  %v737_v53 = vstv %s1002_s17 }
  0xfa   : > { %v750_v17 = vadd.f32 %v749_v30, %v748_v8  ;;  %v708_v60 = vmul.f32 %v1125_v25, %v707_v0  ;;  %v752_v16 = vstv %s1006_s23 }
  0xfb   : > { %s877_s12 = sshll.u32 %s2208_s7, 3  ;;  %s776_s14 = scalar_lea.sflag [#allocation3], %s2208_s7 }
  0xfc   : > { %1130 = vtanh.f32 %v750_v17  ;;  %v1127_v41 = vpop.eup %1126  ;;  %v709_v7 = vadd.f32 %v708_v60, %v694_v46  ;;  %s1009_s11 = sshll.u32 %s2209_s19, 3  ;;  %s194_s25 = scalar_lea.vmem [#allocation6], %s877_s12 }
  0xfd   : > { %v723_v15 = vmul.f32 %v1127_v41, %v722_v58  ;;  %s786_s6 = scalar_lea.hbm %s2210_s18, %s1009_s11  ;;  %s788_s10 = sshll.u32 %s194_s25, 4  ;;  %s789_s10 = int_to_ptr.vmem [resolvable:$true] %s788_s10 }
  0xfe   : > { %s790_s0 = sshll.u32 %s786_s6, 4  ;;  %s1171_s24 = scalar_lea.hbm %s2210_s18, 16  ;;  %s791_s0 = int_to_ptr.hbm [resolvable:$true] %s790_s0 }
  0xff   : > { %v1129_v24 = vpop.eup %1128  ;;  %v724_v14 = vadd.f32 %v723_v15, %v709_v7  ;;  %s1165_s15 = sshra.s32 %s791_s0, 4  ;;  %s1166_s15 = int_to_ptr.hbm [resolvable:$true] %s1165_s15 }
 0x100   : > { %v738_v35 = vmul.f32 %v1129_v24, %v737_v53  ;;  %s1167_s3 = scalar_lea.hbm %s1166_s15, 8  ;;  %p1172_p5 = scmp.lt.s32.totalorder %s1166_s15, %s2210_s18 }
 0x101   : > { %p1168_p2 = scmp.ne.s32.totalorder %s1166_s15, %s1167_s3  ;;  %p1173_p7 = scmp.lt.s32.totalorder %s1171_s24, %s1167_s3 }
 0x102   : > { %v1131_v32 = vpop.eup %1130  ;;  %v739_v44 = vadd.f32 %v738_v35, %v724_v14 }
 0x103   : > { %v753_v13 = vmul.f32 %v1131_v32, %v752_v16  ;;  %p1169_p3 = pnand %p1168_p2, %p1280_p6  ;;  %p1174_p8 = por %p1173_p7, %p1172_p5 }
 0x105   : > { %v754_v34 = vadd.f32 %v753_v13, %v739_v44  ;;  %p1170_p4 = pneg %p1169_p3 }
 0x107   : > { %v1007_v45 = vmul.f32 -1.442695, %v754_v34  ;;  %p1175_p9 = pnand %p1174_p8, %p1170_p4 }
 0x109   : > { %1132 = vpow2.f32 %v1007_v45 }
 0x10f   : > { %v1133_v29 = vpop.eup %1132 }
 0x110   : > { %v758_v31 = vadd.f32 1.0, %v1133_v29 }
 0x112   : > { %1134 = vrcp.f32 %v758_v31  ;;  %v770_v10 = vand.u32 2147483648, %v758_v31  ;;  %vm764_vm0 = vweird.f32 %v758_v31  ;;  %v768_v19 = vand.u32 2147483647, %v758_v31 }
 0x114   : > { %v771_v4 = vor.u32 1.1754944e-38, %v770_v10  ;;  %vm769_vm3 = vcmp.eq.f32.partialorder %v768_v19, 8.507059e+37 }
 0x118   : > { %v1135_v39 = vpop.eup %1134 }
 0x119   : > { %v760_v43 = vmul.f32 %v1135_v39, %v758_v31  ;;  %vm765_vm1 = vweird.f32 %v1135_v39 }
 0x11a   : > { %vm766_vm2 = vmor %vm764_vm0, %vm765_vm1 }
 0x11b   : > { %v761_v62 = vsub.f32 1.0, %v760_v43 }
 0x11d   : > { %v762_v47 = vmul.f32 %v1135_v39, %v761_v62 }
 0x11f   : > { %v763_v2 = vadd.f32 %v1135_v39, %v762_v47 }
 0x121   : > { %v767_v33 = vsel %vm766_vm2, %v1135_v39, %v763_v2 }
 0x122   : > { %v772_v23 = vsel %vm769_vm3, %v771_v4, %v767_v33 }
 0x123   : > { %774 = vst [vmem:[%s194_s25] sm:$0xff] %v772_v23 }
 0x124   : > { %1178 = shalt.err (!%p1175_p9)
}
 0x125   : > { %1016 = dma.vmem_to_hbm [thread:$0]  (%p1280_p6), %s789_s10, 128, %s791_s0, %s776_s14  }
 0x126 PF: > { %s2212_s1 = sld [smem:[#allocation9_spill]]  ;;  %p1023_p11 = pnand %p871_p1, %p1286_p10 }
 0x128   : > { %p1024_p12 = pneg %p1023_p11 }
 0x12c   : > { %s802_s2 = sand.u32 1, %s2212_s1  }
 0x12d   : > { %s803_s20 = scalar_lea.sflag [#allocation3], %s802_s2 }
 0x12e   : > { %1200 = dma.done.wait (%p1024_p12), %s803_s20, 128  }
 0x12f   : > { %1202 = vsyncadd (%p1024_p12), %s803_s20, 4294967168  ;;  %s2215_s12 = sld [smem:[#allocation14_spill]] }
 0x130   : > { %s2216_s9 = sld [smem:[#allocation10_spill]] }
 0x131   : > { %s2217_s10 = sld [smem:[#allocation11_spill]] }
 0x132   : > { %s2218_s11 = sld [smem:[#allocation15_spill]] }
 0x135   : > { %p13_p13 = scmp.ge.s32.totalorder %s2215_s12, 4  }
 0x137   :  { %15 = sbr.rel (!%p13_p13) target bundleno = 8 (0x8), region = 112 }
 0x13c   :  { %809 = vsyncpa [#allocation3], 1 }
 0x13d   :  { %811 = vsyncpa [#allocation3 + $0x1], 1 }
 0x13e   :  { %812 = vsyncpa [#allocation4], 1 }
 0x13f   :  { %814 = vsyncpa [#allocation4 + $0x1], 1 }

</bundles_post_ra>
